<compile_context>
chip_gen: v7x
topology: tpu7x:2x2x1
jax: 0.10.0
libtpu: 0.0.40
codegen_flags: <defaults>
</compile_context>

<pallas_src>
import jax
import jax.numpy as jnp
from jax import lax
from jax.experimental import pallas as pl
from jax.experimental.pallas import tpu as pltpu


def discriminator_kernel(
    x_ref,       # (T*B, 3)   input trajectory, time-major rows flattened
    wihb_ref,    # (4, 4H)    rows 0:3 = fused input weights (i,f,g,o), row 3 = b_ih+b_hh
    whh_ref,     # (H, 4H)    fused LSTM hidden weights, gate order (i,f,g,o)
    w1_ref,      # (H, M)     classifier Linear 1 (pre-transposed, bias dropped: cancels in BN)
    bn1_ref,     # (2, M)     row 0 = BN1 gamma, row 1 = BN1 beta
    w2_ref,      # (M, 1)     classifier Linear 2 (pre-transposed, bias dropped)
    bn2_ref,     # (2,)       SMEM: [BN2 gamma, BN2 beta]
    out_ref,     # (B, 1)     scores
    xproj_ref,   # scratch VMEM (T*B, 4H) f32: staged input projection
    whh_bf_ref,  # scratch VMEM (H, 4H) bf16: one-time bf16 copy of w_hh
):
    B = out_ref.shape[0]
    TB = x_ref.shape[0]
    T = TB // B
    H4 = whh_ref.shape[1]
    H = H4 // 4

    # ---- hoisted input projection (one matmul + bias for all T), staged in VMEM
    # so its live range does not span the unrolled recurrence ----
    xproj_ref[...] = (
        jnp.dot(x_ref[...], wihb_ref[:3, :], preferred_element_type=jnp.float32)
        + wihb_ref[3:4, :]
    )

    # One-time bf16 copy of the recurrent weights (8 vregs instead of 16; re-read
    # from VMEM inside the loop so the compiler need not pin it across all steps).
    whh_bf_ref[...] = whh_ref[...].astype(jnp.bfloat16)

    # ---- LSTM recurrence: carry in registers, fully unrolled, one fused
    # bf16-operand / f32-accumulate matmul per step ----
    h = jnp.zeros((B, H), jnp.float32)
    c = jnp.zeros((B, H), jnp.float32)

    for t in range(T):
        gates = xproj_ref[t * B:(t + 1) * B, :] + jnp.dot(
            h.astype(jnp.bfloat16), whh_bf_ref[...],
            preferred_element_type=jnp.float32)               # (B, 4H) f32
        # (i, f) slab = one full 128-lane vreg for H=64 (unmasked EUP op)
        sig_if = jax.nn.sigmoid(gates[:, :2 * H])
        g_g = jnp.tanh(gates[:, 2 * H:3 * H])
        c = sig_if[:, H:2 * H] * c + sig_if[:, :H] * g_g
        tanh_c = jnp.tanh(c)
        # sigmoid(o) is not needed until after tanh(c): issue it last so its
        # EUP latency hides under the c-path dependency.
        o_g = jax.nn.sigmoid(gates[:, 3 * H:])
        h = o_g * tanh_c

    # ---- classifier: Linear -> BatchNorm1d (batch stats) -> ReLU  (x2) ----
    # Linear biases omitted: they cancel exactly in (z - mean) for train-mode BN.
    eps = 1e-5
    z1 = jnp.dot(h, w1_ref[...], preferred_element_type=jnp.float32)
    m1 = jnp.mean(z1, axis=0, keepdims=True)
    v1 = jnp.mean((z1 - m1) ** 2, axis=0, keepdims=True)
    a1 = jnp.maximum(
        (z1 - m1) * lax.rsqrt(v1 + eps) * bn1_ref[0:1, :] + bn1_ref[1:2, :], 0.0)

    z2 = jnp.dot(a1, w2_ref[...], preferred_element_type=jnp.float32)
    m2 = jnp.mean(z2, axis=0, keepdims=True)
    v2 = jnp.mean((z2 - m2) ** 2, axis=0, keepdims=True)
    out_ref[...] = jnp.maximum(
        (z2 - m2) * lax.rsqrt(v2 + eps) * bn2_ref[0] + bn2_ref[1], 0.0)


def discriminator_forward(traj_rel, kparams):
    """traj_rel: (T, B, 3) float32.  kparams: output of pack_kernel_params.
    Returns scores of shape (B, 1)."""
    T, B, _ = traj_rel.shape
    H = kparams["w_hh"].shape[0]
    x2d = traj_rel.reshape(T * B, 3)     # layout plumbing only (free in XLA)

    inputs = (
        x2d,
        kparams["w_ihb"],   # (4, 4H)
        kparams["w_hh"],    # (H, 4H)
        kparams["w1"],      # (H, M)
        kparams["bn1"],     # (2, M)
        kparams["w2"],      # (M, 1)
        kparams["bn2"],     # (2,)  -> SMEM
    )

    def vmem_spec(shape):
        nd = len(shape)
        return pl.BlockSpec(shape, lambda i, _nd=nd: (0,) * _nd)

    in_specs = [vmem_spec(a.shape) for a in inputs[:-1]]
    in_specs.append(pl.BlockSpec(memory_space=pltpu.MemorySpace.SMEM))

    return pl.pallas_call(
        discriminator_kernel,
        out_shape=jax.ShapeDtypeStruct((B, 1), jnp.float32),
        grid=(1,),
        in_specs=in_specs,
        out_specs=pl.BlockSpec((B, 1), lambda i: (0, 0)),
        scratch_shapes=[
            pltpu.VMEM((T * B, 4 * H), jnp.float32),   # staged xproj
            pltpu.VMEM((H, 4 * H), jnp.bfloat16),      # bf16 copy of w_hh
        ],
    )(*inputs)


def make_params(key, hidden_dim=64, mlp_dim=64):
    """Deterministic synthetic parameters, PyTorch-style layout/init.

    LSTM weights are pre-transposed for x @ W and fused along the gate dim in
    PyTorch's gate order (i, f, g, o).
    """
    H, M = hidden_dim, mlp_dim
    ks = jax.random.split(key, 12)
    s_lstm = 1.0 / jnp.sqrt(H)
    s_l1 = 1.0 / jnp.sqrt(H)
    s_l2 = 1.0 / jnp.sqrt(M)
    u = lambda k, shape, s: jax.random.uniform(k, shape, jnp.float32, -s, s)
    return {
        # LSTM
        "w_ih": u(ks[0], (3, 4 * H), s_lstm),
        "w_hh": u(ks[1], (H, 4 * H), s_lstm),
        "b_ih": u(ks[2], (1, 4 * H), s_lstm),
        "b_hh": u(ks[3], (1, 4 * H), s_lstm),
        # classifier Linear 1 + BN1
        "w1":  u(ks[4], (H, M), s_l1),
        "b1":  u(ks[5], (1, M), s_l1),
        "g1":  1.0 + 0.1 * jax.random.normal(ks[6], (1, M), jnp.float32),
        "be1": 0.1 * jax.random.normal(ks[7], (1, M), jnp.float32),
        # classifier Linear 2 + BN2
        "w2":  u(ks[8], (M, 1), s_l2),
        "b2":  u(ks[9], (1, 1), s_l2),
        "g2":  1.0 + 0.1 * jax.random.normal(ks[10], (1, 1), jnp.float32),
        "be2": 0.1 * jax.random.normal(ks[11], (1, 1), jnp.float32),
    }


def pack_kernel_params(p):
    """Pack PyTorch-style params into the kernel's consolidated inputs (done once).

    b1/b2 are intentionally dropped: with training-mode BatchNorm the Linear bias
    cancels exactly in (z - mean), so it never needs to reach the kernel.
    """
    return {
        "w_ihb": jnp.concatenate([p["w_ih"], p["b_ih"] + p["b_hh"]], axis=0),   # (4, 4H)
        "w_hh":  p["w_hh"],                                                     # (H, 4H)
        "w1":    p["w1"],                                                       # (H, M)
        "bn1":   jnp.concatenate([p["g1"], p["be1"]], axis=0),                  # (2, M)
        "w2":    p["w2"],                                                       # (M, 1)
        "bn2":   jnp.concatenate([p["g2"].reshape(-1), p["be2"].reshape(-1)]),  # (2,)
    }


def reference_forward(x, p, recurrent_matmul_dtype=jnp.float32):
    """Pure-JAX reference (includes the Linear biases b1/b2; PyTorch gate order).

    recurrent_matmul_dtype=jnp.bfloat16 mirrors the kernel's bf16-operand /
    f32-accumulate recurrent matmul; jnp.float32 gives full module semantics.
    """
    T, B, _ = x.shape
    H = p["w_hh"].shape[0]
    hp = lax.Precision.HIGHEST
    b = p["b_ih"] + p["b_hh"]
    xproj = (jnp.dot(x.reshape(T * B, 3), p["w_ih"], precision=hp) + b
             ).reshape(T, B, 4 * H)
    w_hh = p["w_hh"].astype(recurrent_matmul_dtype)

    def step(carry, xp_t):
        h, c = carry
        gates = xp_t + jnp.dot(h.astype(recurrent_matmul_dtype), w_hh,
                               preferred_element_type=jnp.float32)
        i_g = jax.nn.sigmoid(gates[:, :H])
        f_g = jax.nn.sigmoid(gates[:, H:2 * H])
        g_g = jnp.tanh(gates[:, 2 * H:3 * H])
        o_g = jax.nn.sigmoid(gates[:, 3 * H:])
        c = f_g * c + i_g * g_g
        h = o_g * jnp.tanh(c)
        return (h, c), None

    h0 = jnp.zeros((B, H), jnp.float32)
    c0 = jnp.zeros((B, H), jnp.float32)
    (h, _), _ = lax.scan(step, (h0, c0), xproj)

    eps = 1e-5
    z1 = jnp.dot(h, p["w1"], precision=hp) + p["b1"]
    m1 = z1.mean(0, keepdims=True)
    v1 = ((z1 - m1) ** 2).mean(0, keepdims=True)
    a1 = jnp.maximum((z1 - m1) * lax.rsqrt(v1 + eps) * p["g1"] + p["be1"], 0.0)
    z2 = jnp.dot(a1, p["w2"], precision=hp) + p["b2"]
    m2 = z2.mean(0, keepdims=True)
    v2 = ((z2 - m2) ** 2).mean(0, keepdims=True)
    return jnp.maximum((z2 - m2) * lax.rsqrt(v2 + eps) * p["g2"] + p["be2"], 0.0)


if __name__ == "__main__":
    key = jax.random.PRNGKey(0)
    k_x, k_p = jax.random.split(key)

    T, B = 12, 8                       # obs_len + pred_len, batch
    H, M = 64, 64                      # encoder_h_dim, mlp_dim (module defaults)

    traj_rel = jax.random.normal(k_x, (T, B, 3), dtype=jnp.float32)
    params = make_params(k_p, hidden_dim=H, mlp_dim=M)
    kparams = pack_kernel_params(params)

    scores = jax.block_until_ready(discriminator_forward(traj_rel, kparams))
    assert scores.shape == (B, 1)

    # Implementation check: reference using the same bf16 recurrent-matmul operands
    # (validates gate order, BN math, and the b1/b2-cancellation packing).
    ref_bf16 = jax.block_until_ready(
        reference_forward(traj_rel, params, recurrent_matmul_dtype=jnp.bfloat16))
    assert jnp.allclose(scores, ref_bf16, atol=1e-2, rtol=1e-2), (scores, ref_bf16)

    # Module-semantics check: full-f32 reference; the (small) gap is bf16 operand
    # rounding in the recurrent matmul only.
    ref_f32 = jax.block_until_ready(
        reference_forward(traj_rel, params, recurrent_matmul_dtype=jnp.float32))
    assert jnp.allclose(scores, ref_f32, atol=1e-1, rtol=1e-1), (scores, ref_f32)

    print("KERNEL_OK")
</pallas_src>

<mosaic_0001>
module attributes {stable_mosaic.version = 11 : i64} {
  func.func @discriminator_kernel(%arg0: i32, %arg1: memref<96x3xf32, #tpu.memory_space<vmem>>, %arg2: memref<4x256xf32, #tpu.memory_space<vmem>>, %arg3: memref<64x256xf32, #tpu.memory_space<vmem>>, %arg4: memref<64x64xf32, #tpu.memory_space<vmem>>, %arg5: memref<2x64xf32, #tpu.memory_space<vmem>>, %arg6: memref<64x1xf32, #tpu.memory_space<vmem>>, %arg7: memref<2xf32, #tpu.memory_space<smem>>, %arg8: memref<8x1xf32, #tpu.memory_space<vmem>>, %arg9: memref<96x256xf32, #tpu.memory_space<vmem>>, %arg10: memref<64x256xbf16, #tpu.memory_space<vmem>>) attributes {dimension_semantics = [#tpu.dimension_semantics<arbitrary>], iteration_bounds = array<i64: 1>, scalar_prefetch = 0 : i64, scratch_operands = 2 : i64, tpu.core_type = #tpu.core_type<tc>, window_params = [{pipeline_mode = #tpu.pipeline_mode<synchronous>, transform_indices = @transform_0, window_bounds = array<i64: 96, 3>}, {pipeline_mode = #tpu.pipeline_mode<synchronous>, transform_indices = @transform_1, window_bounds = array<i64: 4, 256>}, {pipeline_mode = #tpu.pipeline_mode<synchronous>, transform_indices = @transform_2, window_bounds = array<i64: 64, 256>}, {pipeline_mode = #tpu.pipeline_mode<synchronous>, transform_indices = @transform_3, window_bounds = array<i64: 64, 64>}, {pipeline_mode = #tpu.pipeline_mode<synchronous>, transform_indices = @transform_4, window_bounds = array<i64: 2, 64>}, {pipeline_mode = #tpu.pipeline_mode<synchronous>, transform_indices = @transform_5, window_bounds = array<i64: 64, 1>}, {transform_indices = @transform_6, window_bounds = array<i64: 2>}, {pipeline_mode = #tpu.pipeline_mode<synchronous>, transform_indices = @transform_7, window_bounds = array<i64: 8, 1>}]} {
    %c0 = arith.constant 0 : index
    %c0_0 = arith.constant 0 : index
    %0 = vector.load %arg1[%c0, %c0_0] : memref<96x3xf32, #tpu.memory_space<vmem>>, vector<96x3xf32>
    %c0_1 = arith.constant 0 : index
    %c0_2 = arith.constant 0 : index
    %1 = vector.load %arg2[%c0_1, %c0_2] : memref<4x256xf32, #tpu.memory_space<vmem>>, vector<3x256xf32>
    %cst = arith.constant dense<0.000000e+00> : vector<96x256xf32>
    %2 = tpu.matmul %0, %1, %cst {dimension_numbers = #tpu.dot_dimension_numbers<[1], [0], [0], [1], [0, 0, 1, 1], [], []>} : vector<96x3xf32>, vector<3x256xf32>, vector<96x256xf32> -> vector<96x256xf32>
    %c3 = arith.constant 3 : index
    %c0_3 = arith.constant 0 : index
    %3 = vector.load %arg2[%c3, %c0_3] : memref<4x256xf32, #tpu.memory_space<vmem>>, vector<1x256xf32>
    %4 = vector.broadcast %3 : vector<1x256xf32> to vector<96x256xf32>
    %5 = arith.addf %2, %4 : vector<96x256xf32>
    %c0_4 = arith.constant 0 : index
    %c0_5 = arith.constant 0 : index
    %6 = vector.load %arg9[%c0_4, %c0_5] : memref<96x256xf32, #tpu.memory_space<vmem>>, vector<96x256xf32>
    tpu.vector_store %arg9[%c0_4, %c0_5], %5 {strides = array<i32>} : memref<96x256xf32, #tpu.memory_space<vmem>>, vector<96x256xf32>,
    %c0_6 = arith.constant 0 : index
    %c0_7 = arith.constant 0 : index
    %7 = vector.load %arg3[%c0_6, %c0_7] : memref<64x256xf32, #tpu.memory_space<vmem>>, vector<64x256xf32>
    %8 = arith.truncf %7 : vector<64x256xf32> to vector<64x256xbf16>
    %c0_8 = arith.constant 0 : index
    %c0_9 = arith.constant 0 : index
    %9 = vector.load %arg10[%c0_8, %c0_9] : memref<64x256xbf16, #tpu.memory_space<vmem>>, vector<64x256xbf16>
    tpu.vector_store %arg10[%c0_8, %c0_9], %8 {strides = array<i32>} : memref<64x256xbf16, #tpu.memory_space<vmem>>, vector<64x256xbf16>,
    %cst_10 = arith.constant 0.000000e+00 : f32
    %10 = vector.broadcast %cst_10 : f32 to vector<8x64xf32>
    %cst_11 = arith.constant 0.000000e+00 : f32
    %11 = vector.broadcast %cst_11 : f32 to vector<8x64xf32>
    %c0_12 = arith.constant 0 : index
    %c0_13 = arith.constant 0 : index
    %12 = vector.load %arg9[%c0_12, %c0_13] : memref<96x256xf32, #tpu.memory_space<vmem>>, vector<8x256xf32>
    %13 = arith.truncf %10 : vector<8x64xf32> to vector<8x64xbf16>
    %c0_14 = arith.constant 0 : index
    %c0_15 = arith.constant 0 : index
    %14 = vector.load %arg10[%c0_14, %c0_15] : memref<64x256xbf16, #tpu.memory_space<vmem>>, vector<64x256xbf16>
    %cst_16 = arith.constant dense<0.000000e+00> : vector<8x256xf32>
    %15 = tpu.matmul %13, %14, %cst_16 {dimension_numbers = #tpu.dot_dimension_numbers<[1], [0], [0], [1], [0, 0, 1, 1], [], []>} : vector<8x64xbf16>, vector<64x256xbf16>, vector<8x256xf32> -> vector<8x256xf32>
    %16 = arith.addf %12, %15 : vector<8x256xf32>
    %17 = vector.extract_strided_slice %16 {offsets = [0, 0], sizes = [8, 128], strides = [1, 1]} : vector<8x256xf32> to vector<8x128xf32>
    %18 = arith.negf %17 : vector<8x128xf32>
    %19 = math.exp %18 : vector<8x128xf32>
    %cst_17 = arith.constant 1.000000e+00 : f32
    %20 = vector.broadcast %cst_17 : f32 to vector<8x128xf32>
    %21 = arith.addf %20, %19 : vector<8x128xf32>
    %22 = arith.divf %20, %21 : vector<8x128xf32>
    %23 = vector.extract_strided_slice %16 {offsets = [0, 128], sizes = [8, 64], strides = [1, 1]} : vector<8x256xf32> to vector<8x64xf32>
    %24 = math.tanh %23 : vector<8x64xf32>
    %25 = vector.extract_strided_slice %22 {offsets = [0, 64], sizes = [8, 64], strides = [1, 1]} : vector<8x128xf32> to vector<8x64xf32>
    %26 = arith.mulf %25, %11 : vector<8x64xf32>
    %27 = vector.extract_strided_slice %22 {offsets = [0, 0], sizes = [8, 64], strides = [1, 1]} : vector<8x128xf32> to vector<8x64xf32>
    %28 = arith.mulf %27, %24 : vector<8x64xf32>
    %29 = arith.addf %26, %28 : vector<8x64xf32>
    %30 = math.tanh %29 : vector<8x64xf32>
    %31 = vector.extract_strided_slice %16 {offsets = [0, 192], sizes = [8, 64], strides = [1, 1]} : vector<8x256xf32> to vector<8x64xf32>
    %32 = arith.negf %31 : vector<8x64xf32>
    %33 = math.exp %32 : vector<8x64xf32>
    %cst_18 = arith.constant 1.000000e+00 : f32
    %34 = vector.broadcast %cst_18 : f32 to vector<8x64xf32>
    %35 = arith.addf %34, %33 : vector<8x64xf32>
    %36 = arith.divf %34, %35 : vector<8x64xf32>
    %37 = arith.mulf %36, %30 : vector<8x64xf32>
    %c8 = arith.constant 8 : index
    %c0_19 = arith.constant 0 : index
    %38 = vector.load %arg9[%c8, %c0_19] : memref<96x256xf32, #tpu.memory_space<vmem>>, vector<8x256xf32>
    %39 = arith.truncf %37 : vector<8x64xf32> to vector<8x64xbf16>
    %c0_20 = arith.constant 0 : index
    %c0_21 = arith.constant 0 : index
    %40 = vector.load %arg10[%c0_20, %c0_21] : memref<64x256xbf16, #tpu.memory_space<vmem>>, vector<64x256xbf16>
    %cst_22 = arith.constant dense<0.000000e+00> : vector<8x256xf32>
    %41 = tpu.matmul %39, %40, %cst_22 {dimension_numbers = #tpu.dot_dimension_numbers<[1], [0], [0], [1], [0, 0, 1, 1], [], []>} : vector<8x64xbf16>, vector<64x256xbf16>, vector<8x256xf32> -> vector<8x256xf32>
    %42 = arith.addf %38, %41 : vector<8x256xf32>
    %43 = vector.extract_strided_slice %42 {offsets = [0, 0], sizes = [8, 128], strides = [1, 1]} : vector<8x256xf32> to vector<8x128xf32>
    %44 = arith.negf %43 : vector<8x128xf32>
    %45 = math.exp %44 : vector<8x128xf32>
    %cst_23 = arith.constant 1.000000e+00 : f32
    %46 = vector.broadcast %cst_23 : f32 to vector<8x128xf32>
    %47 = arith.addf %46, %45 : vector<8x128xf32>
    %48 = arith.divf %46, %47 : vector<8x128xf32>
    %49 = vector.extract_strided_slice %42 {offsets = [0, 128], sizes = [8, 64], strides = [1, 1]} : vector<8x256xf32> to vector<8x64xf32>
    %50 = math.tanh %49 : vector<8x64xf32>
    %51 = vector.extract_strided_slice %48 {offsets = [0, 64], sizes = [8, 64], strides = [1, 1]} : vector<8x128xf32> to vector<8x64xf32>
    %52 = arith.mulf %51, %29 : vector<8x64xf32>
    %53 = vector.extract_strided_slice %48 {offsets = [0, 0], sizes = [8, 64], strides = [1, 1]} : vector<8x128xf32> to vector<8x64xf32>
    %54 = arith.mulf %53, %50 : vector<8x64xf32>
    %55 = arith.addf %52, %54 : vector<8x64xf32>
    %56 = math.tanh %55 : vector<8x64xf32>
    %57 = vector.extract_strided_slice %42 {offsets = [0, 192], sizes = [8, 64], strides = [1, 1]} : vector<8x256xf32> to vector<8x64xf32>
    %58 = arith.negf %57 : vector<8x64xf32>
    %59 = math.exp %58 : vector<8x64xf32>
    %cst_24 = arith.constant 1.000000e+00 : f32
    %60 = vector.broadcast %cst_24 : f32 to vector<8x64xf32>
    %61 = arith.addf %60, %59 : vector<8x64xf32>
    %62 = arith.divf %60, %61 : vector<8x64xf32>
    %63 = arith.mulf %62, %56 : vector<8x64xf32>
    %c16 = arith.constant 16 : index
    %c0_25 = arith.constant 0 : index
    %64 = vector.load %arg9[%c16, %c0_25] : memref<96x256xf32, #tpu.memory_space<vmem>>, vector<8x256xf32>
    %65 = arith.truncf %63 : vector<8x64xf32> to vector<8x64xbf16>
    %c0_26 = arith.constant 0 : index
    %c0_27 = arith.constant 0 : index
    %66 = vector.load %arg10[%c0_26, %c0_27] : memref<64x256xbf16, #tpu.memory_space<vmem>>, vector<64x256xbf16>
    %cst_28 = arith.constant dense<0.000000e+00> : vector<8x256xf32>
    %67 = tpu.matmul %65, %66, %cst_28 {dimension_numbers = #tpu.dot_dimension_numbers<[1], [0], [0], [1], [0, 0, 1, 1], [], []>} : vector<8x64xbf16>, vector<64x256xbf16>, vector<8x256xf32> -> vector<8x256xf32>
    %68 = arith.addf %64, %67 : vector<8x256xf32>
    %69 = vector.extract_strided_slice %68 {offsets = [0, 0], sizes = [8, 128], strides = [1, 1]} : vector<8x256xf32> to vector<8x128xf32>
    %70 = arith.negf %69 : vector<8x128xf32>
    %71 = math.exp %70 : vector<8x128xf32>
    %cst_29 = arith.constant 1.000000e+00 : f32
    %72 = vector.broadcast %cst_29 : f32 to vector<8x128xf32>
    %73 = arith.addf %72, %71 : vector<8x128xf32>
    %74 = arith.divf %72, %73 : vector<8x128xf32>
    %75 = vector.extract_strided_slice %68 {offsets = [0, 128], sizes = [8, 64], strides = [1, 1]} : vector<8x256xf32> to vector<8x64xf32>
    %76 = math.tanh %75 : vector<8x64xf32>
    %77 = vector.extract_strided_slice %74 {offsets = [0, 64], sizes = [8, 64], strides = [1, 1]} : vector<8x128xf32> to vector<8x64xf32>
    %78 = arith.mulf %77, %55 : vector<8x64xf32>
    %79 = vector.extract_strided_slice %74 {offsets = [0, 0], sizes = [8, 64], strides = [1, 1]} : vector<8x128xf32> to vector<8x64xf32>
    %80 = arith.mulf %79, %76 : vector<8x64xf32>
    %81 = arith.addf %78, %80 : vector<8x64xf32>
    %82 = math.tanh %81 : vector<8x64xf32>
    %83 = vector.extract_strided_slice %68 {offsets = [0, 192], sizes = [8, 64], strides = [1, 1]} : vector<8x256xf32> to vector<8x64xf32>
    %84 = arith.negf %83 : vector<8x64xf32>
    %85 = math.exp %84 : vector<8x64xf32>
    %cst_30 = arith.constant 1.000000e+00 : f32
    %86 = vector.broadcast %cst_30 : f32 to vector<8x64xf32>
    %87 = arith.addf %86, %85 : vector<8x64xf32>
    %88 = arith.divf %86, %87 : vector<8x64xf32>
    %89 = arith.mulf %88, %82 : vector<8x64xf32>
    %c24 = arith.constant 24 : index
    %c0_31 = arith.constant 0 : index
    %90 = vector.load %arg9[%c24, %c0_31] : memref<96x256xf32, #tpu.memory_space<vmem>>, vector<8x256xf32>
    %91 = arith.truncf %89 : vector<8x64xf32> to vector<8x64xbf16>
    %c0_32 = arith.constant 0 : index
    %c0_33 = arith.constant 0 : index
    %92 = vector.load %arg10[%c0_32, %c0_33] : memref<64x256xbf16, #tpu.memory_space<vmem>>, vector<64x256xbf16>
    %cst_34 = arith.constant dense<0.000000e+00> : vector<8x256xf32>
    %93 = tpu.matmul %91, %92, %cst_34 {dimension_numbers = #tpu.dot_dimension_numbers<[1], [0], [0], [1], [0, 0, 1, 1], [], []>} : vector<8x64xbf16>, vector<64x256xbf16>, vector<8x256xf32> -> vector<8x256xf32>
    %94 = arith.addf %90, %93 : vector<8x256xf32>
    %95 = vector.extract_strided_slice %94 {offsets = [0, 0], sizes = [8, 128], strides = [1, 1]} : vector<8x256xf32> to vector<8x128xf32>
    %96 = arith.negf %95 : vector<8x128xf32>
    %97 = math.exp %96 : vector<8x128xf32>
    %cst_35 = arith.constant 1.000000e+00 : f32
    %98 = vector.broadcast %cst_35 : f32 to vector<8x128xf32>
    %99 = arith.addf %98, %97 : vector<8x128xf32>
    %100 = arith.divf %98, %99 : vector<8x128xf32>
    %101 = vector.extract_strided_slice %94 {offsets = [0, 128], sizes = [8, 64], strides = [1, 1]} : vector<8x256xf32> to vector<8x64xf32>
    %102 = math.tanh %101 : vector<8x64xf32>
    %103 = vector.extract_strided_slice %100 {offsets = [0, 64], sizes = [8, 64], strides = [1, 1]} : vector<8x128xf32> to vector<8x64xf32>
    %104 = arith.mulf %103, %81 : vector<8x64xf32>
    %105 = vector.extract_strided_slice %100 {offsets = [0, 0], sizes = [8, 64], strides = [1, 1]} : vector<8x128xf32> to vector<8x64xf32>
    %106 = arith.mulf %105, %102 : vector<8x64xf32>
    %107 = arith.addf %104, %106 : vector<8x64xf32>
    %108 = math.tanh %107 : vector<8x64xf32>
    %109 = vector.extract_strided_slice %94 {offsets = [0, 192], sizes = [8, 64], strides = [1, 1]} : vector<8x256xf32> to vector<8x64xf32>
    %110 = arith.negf %109 : vector<8x64xf32>
    %111 = math.exp %110 : vector<8x64xf32>
    %cst_36 = arith.constant 1.000000e+00 : f32
    %112 = vector.broadcast %cst_36 : f32 to vector<8x64xf32>
    %113 = arith.addf %112, %111 : vector<8x64xf32>
    %114 = arith.divf %112, %113 : vector<8x64xf32>
    %115 = arith.mulf %114, %108 : vector<8x64xf32>
    %c32 = arith.constant 32 : index
    %c0_37 = arith.constant 0 : index
    %116 = vector.load %arg9[%c32, %c0_37] : memref<96x256xf32, #tpu.memory_space<vmem>>, vector<8x256xf32>
    %117 = arith.truncf %115 : vector<8x64xf32> to vector<8x64xbf16>
    %c0_38 = arith.constant 0 : index
    %c0_39 = arith.constant 0 : index
    %118 = vector.load %arg10[%c0_38, %c0_39] : memref<64x256xbf16, #tpu.memory_space<vmem>>, vector<64x256xbf16>
    %cst_40 = arith.constant dense<0.000000e+00> : vector<8x256xf32>
    %119 = tpu.matmul %117, %118, %cst_40 {dimension_numbers = #tpu.dot_dimension_numbers<[1], [0], [0], [1], [0, 0, 1, 1], [], []>} : vector<8x64xbf16>, vector<64x256xbf16>, vector<8x256xf32> -> vector<8x256xf32>
    %120 = arith.addf %116, %119 : vector<8x256xf32>
    %121 = vector.extract_strided_slice %120 {offsets = [0, 0], sizes = [8, 128], strides = [1, 1]} : vector<8x256xf32> to vector<8x128xf32>
    %122 = arith.negf %121 : vector<8x128xf32>
    %123 = math.exp %122 : vector<8x128xf32>
    %cst_41 = arith.constant 1.000000e+00 : f32
    %124 = vector.broadcast %cst_41 : f32 to vector<8x128xf32>
    %125 = arith.addf %124, %123 : vector<8x128xf32>
    %126 = arith.divf %124, %125 : vector<8x128xf32>
    %127 = vector.extract_strided_slice %120 {offsets = [0, 128], sizes = [8, 64], strides = [1, 1]} : vector<8x256xf32> to vector<8x64xf32>
    %128 = math.tanh %127 : vector<8x64xf32>
    %129 = vector.extract_strided_slice %126 {offsets = [0, 64], sizes = [8, 64], strides = [1, 1]} : vector<8x128xf32> to vector<8x64xf32>
    %130 = arith.mulf %129, %107 : vector<8x64xf32>
    %131 = vector.extract_strided_slice %126 {offsets = [0, 0], sizes = [8, 64], strides = [1, 1]} : vector<8x128xf32> to vector<8x64xf32>
    %132 = arith.mulf %131, %128 : vector<8x64xf32>
    %133 = arith.addf %130, %132 : vector<8x64xf32>
    %134 = math.tanh %133 : vector<8x64xf32>
    %135 = vector.extract_strided_slice %120 {offsets = [0, 192], sizes = [8, 64], strides = [1, 1]} : vector<8x256xf32> to vector<8x64xf32>
    %136 = arith.negf %135 : vector<8x64xf32>
    %137 = math.exp %136 : vector<8x64xf32>
    %cst_42 = arith.constant 1.000000e+00 : f32
    %138 = vector.broadcast %cst_42 : f32 to vector<8x64xf32>
    %139 = arith.addf %138, %137 : vector<8x64xf32>
    %140 = arith.divf %138, %139 : vector<8x64xf32>
    %141 = arith.mulf %140, %134 : vector<8x64xf32>
    %c40 = arith.constant 40 : index
    %c0_43 = arith.constant 0 : index
    %142 = vector.load %arg9[%c40, %c0_43] : memref<96x256xf32, #tpu.memory_space<vmem>>, vector<8x256xf32>
    %143 = arith.truncf %141 : vector<8x64xf32> to vector<8x64xbf16>
    %c0_44 = arith.constant 0 : index
    %c0_45 = arith.constant 0 : index
    %144 = vector.load %arg10[%c0_44, %c0_45] : memref<64x256xbf16, #tpu.memory_space<vmem>>, vector<64x256xbf16>
    %cst_46 = arith.constant dense<0.000000e+00> : vector<8x256xf32>
    %145 = tpu.matmul %143, %144, %cst_46 {dimension_numbers = #tpu.dot_dimension_numbers<[1], [0], [0], [1], [0, 0, 1, 1], [], []>} : vector<8x64xbf16>, vector<64x256xbf16>, vector<8x256xf32> -> vector<8x256xf32>
    %146 = arith.addf %142, %145 : vector<8x256xf32>
    %147 = vector.extract_strided_slice %146 {offsets = [0, 0], sizes = [8, 128], strides = [1, 1]} : vector<8x256xf32> to vector<8x128xf32>
    %148 = arith.negf %147 : vector<8x128xf32>
    %149 = math.exp %148 : vector<8x128xf32>
    %cst_47 = arith.constant 1.000000e+00 : f32
    %150 = vector.broadcast %cst_47 : f32 to vector<8x128xf32>
    %151 = arith.addf %150, %149 : vector<8x128xf32>
    %152 = arith.divf %150, %151 : vector<8x128xf32>
    %153 = vector.extract_strided_slice %146 {offsets = [0, 128], sizes = [8, 64], strides = [1, 1]} : vector<8x256xf32> to vector<8x64xf32>
    %154 = math.tanh %153 : vector<8x64xf32>
    %155 = vector.extract_strided_slice %152 {offsets = [0, 64], sizes = [8, 64], strides = [1, 1]} : vector<8x128xf32> to vector<8x64xf32>
    %156 = arith.mulf %155, %133 : vector<8x64xf32>
    %157 = vector.extract_strided_slice %152 {offsets = [0, 0], sizes = [8, 64], strides = [1, 1]} : vector<8x128xf32> to vector<8x64xf32>
    %158 = arith.mulf %157, %154 : vector<8x64xf32>
    %159 = arith.addf %156, %158 : vector<8x64xf32>
    %160 = math.tanh %159 : vector<8x64xf32>
    %161 = vector.extract_strided_slice %146 {offsets = [0, 192], sizes = [8, 64], strides = [1, 1]} : vector<8x256xf32> to vector<8x64xf32>
    %162 = arith.negf %161 : vector<8x64xf32>
    %163 = math.exp %162 : vector<8x64xf32>
    %cst_48 = arith.constant 1.000000e+00 : f32
    %164 = vector.broadcast %cst_48 : f32 to vector<8x64xf32>
    %165 = arith.addf %164, %163 : vector<8x64xf32>
    %166 = arith.divf %164, %165 : vector<8x64xf32>
    %167 = arith.mulf %166, %160 : vector<8x64xf32>
    %c48 = arith.constant 48 : index
    %c0_49 = arith.constant 0 : index
    %168 = vector.load %arg9[%c48, %c0_49] : memref<96x256xf32, #tpu.memory_space<vmem>>, vector<8x256xf32>
    %169 = arith.truncf %167 : vector<8x64xf32> to vector<8x64xbf16>
    %c0_50 = arith.constant 0 : index
    %c0_51 = arith.constant 0 : index
    %170 = vector.load %arg10[%c0_50, %c0_51] : memref<64x256xbf16, #tpu.memory_space<vmem>>, vector<64x256xbf16>
    %cst_52 = arith.constant dense<0.000000e+00> : vector<8x256xf32>
    %171 = tpu.matmul %169, %170, %cst_52 {dimension_numbers = #tpu.dot_dimension_numbers<[1], [0], [0], [1], [0, 0, 1, 1], [], []>} : vector<8x64xbf16>, vector<64x256xbf16>, vector<8x256xf32> -> vector<8x256xf32>
    %172 = arith.addf %168, %171 : vector<8x256xf32>
    %173 = vector.extract_strided_slice %172 {offsets = [0, 0], sizes = [8, 128], strides = [1, 1]} : vector<8x256xf32> to vector<8x128xf32>
    %174 = arith.negf %173 : vector<8x128xf32>
    %175 = math.exp %174 : vector<8x128xf32>
    %cst_53 = arith.constant 1.000000e+00 : f32
    %176 = vector.broadcast %cst_53 : f32 to vector<8x128xf32>
    %177 = arith.addf %176, %175 : vector<8x128xf32>
    %178 = arith.divf %176, %177 : vector<8x128xf32>
    %179 = vector.extract_strided_slice %172 {offsets = [0, 128], sizes = [8, 64], strides = [1, 1]} : vector<8x256xf32> to vector<8x64xf32>
    %180 = math.tanh %179 : vector<8x64xf32>
    %181 = vector.extract_strided_slice %178 {offsets = [0, 64], sizes = [8, 64], strides = [1, 1]} : vector<8x128xf32> to vector<8x64xf32>
    %182 = arith.mulf %181, %159 : vector<8x64xf32>
    %183 = vector.extract_strided_slice %178 {offsets = [0, 0], sizes = [8, 64], strides = [1, 1]} : vector<8x128xf32> to vector<8x64xf32>
    %184 = arith.mulf %183, %180 : vector<8x64xf32>
    %185 = arith.addf %182, %184 : vector<8x64xf32>
    %186 = math.tanh %185 : vector<8x64xf32>
    %187 = vector.extract_strided_slice %172 {offsets = [0, 192], sizes = [8, 64], strides = [1, 1]} : vector<8x256xf32> to vector<8x64xf32>
    %188 = arith.negf %187 : vector<8x64xf32>
    %189 = math.exp %188 : vector<8x64xf32>
    %cst_54 = arith.constant 1.000000e+00 : f32
    %190 = vector.broadcast %cst_54 : f32 to vector<8x64xf32>
    %191 = arith.addf %190, %189 : vector<8x64xf32>
    %192 = arith.divf %190, %191 : vector<8x64xf32>
    %193 = arith.mulf %192, %186 : vector<8x64xf32>
    %c56 = arith.constant 56 : index
    %c0_55 = arith.constant 0 : index
    %194 = vector.load %arg9[%c56, %c0_55] : memref<96x256xf32, #tpu.memory_space<vmem>>, vector<8x256xf32>
    %195 = arith.truncf %193 : vector<8x64xf32> to vector<8x64xbf16>
    %c0_56 = arith.constant 0 : index
    %c0_57 = arith.constant 0 : index
    %196 = vector.load %arg10[%c0_56, %c0_57] : memref<64x256xbf16, #tpu.memory_space<vmem>>, vector<64x256xbf16>
    %cst_58 = arith.constant dense<0.000000e+00> : vector<8x256xf32>
    %197 = tpu.matmul %195, %196, %cst_58 {dimension_numbers = #tpu.dot_dimension_numbers<[1], [0], [0], [1], [0, 0, 1, 1], [], []>} : vector<8x64xbf16>, vector<64x256xbf16>, vector<8x256xf32> -> vector<8x256xf32>
    %198 = arith.addf %194, %197 : vector<8x256xf32>
    %199 = vector.extract_strided_slice %198 {offsets = [0, 0], sizes = [8, 128], strides = [1, 1]} : vector<8x256xf32> to vector<8x128xf32>
    %200 = arith.negf %199 : vector<8x128xf32>
    %201 = math.exp %200 : vector<8x128xf32>
    %cst_59 = arith.constant 1.000000e+00 : f32
    %202 = vector.broadcast %cst_59 : f32 to vector<8x128xf32>
    %203 = arith.addf %202, %201 : vector<8x128xf32>
    %204 = arith.divf %202, %203 : vector<8x128xf32>
    %205 = vector.extract_strided_slice %198 {offsets = [0, 128], sizes = [8, 64], strides = [1, 1]} : vector<8x256xf32> to vector<8x64xf32>
    %206 = math.tanh %205 : vector<8x64xf32>
    %207 = vector.extract_strided_slice %204 {offsets = [0, 64], sizes = [8, 64], strides = [1, 1]} : vector<8x128xf32> to vector<8x64xf32>
    %208 = arith.mulf %207, %185 : vector<8x64xf32>
    %209 = vector.extract_strided_slice %204 {offsets = [0, 0], sizes = [8, 64], strides = [1, 1]} : vector<8x128xf32> to vector<8x64xf32>
    %210 = arith.mulf %209, %206 : vector<8x64xf32>
    %211 = arith.addf %208, %210 : vector<8x64xf32>
    %212 = math.tanh %211 : vector<8x64xf32>
    %213 = vector.extract_strided_slice %198 {offsets = [0, 192], sizes = [8, 64], strides = [1, 1]} : vector<8x256xf32> to vector<8x64xf32>
    %214 = arith.negf %213 : vector<8x64xf32>
    %215 = math.exp %214 : vector<8x64xf32>
    %cst_60 = arith.constant 1.000000e+00 : f32
    %216 = vector.broadcast %cst_60 : f32 to vector<8x64xf32>
    %217 = arith.addf %216, %215 : vector<8x64xf32>
    %218 = arith.divf %216, %217 : vector<8x64xf32>
    %219 = arith.mulf %218, %212 : vector<8x64xf32>
    %c64 = arith.constant 64 : index
    %c0_61 = arith.constant 0 : index
    %220 = vector.load %arg9[%c64, %c0_61] : memref<96x256xf32, #tpu.memory_space<vmem>>, vector<8x256xf32>
    %221 = arith.truncf %219 : vector<8x64xf32> to vector<8x64xbf16>
    %c0_62 = arith.constant 0 : index
    %c0_63 = arith.constant 0 : index
    %222 = vector.load %arg10[%c0_62, %c0_63] : memref<64x256xbf16, #tpu.memory_space<vmem>>, vector<64x256xbf16>
    %cst_64 = arith.constant dense<0.000000e+00> : vector<8x256xf32>
    %223 = tpu.matmul %221, %222, %cst_64 {dimension_numbers = #tpu.dot_dimension_numbers<[1], [0], [0], [1], [0, 0, 1, 1], [], []>} : vector<8x64xbf16>, vector<64x256xbf16>, vector<8x256xf32> -> vector<8x256xf32>
    %224 = arith.addf %220, %223 : vector<8x256xf32>
    %225 = vector.extract_strided_slice %224 {offsets = [0, 0], sizes = [8, 128], strides = [1, 1]} : vector<8x256xf32> to vector<8x128xf32>
    %226 = arith.negf %225 : vector<8x128xf32>
    %227 = math.exp %226 : vector<8x128xf32>
    %cst_65 = arith.constant 1.000000e+00 : f32
    %228 = vector.broadcast %cst_65 : f32 to vector<8x128xf32>
    %229 = arith.addf %228, %227 : vector<8x128xf32>
    %230 = arith.divf %228, %229 : vector<8x128xf32>
    %231 = vector.extract_strided_slice %224 {offsets = [0, 128], sizes = [8, 64], strides = [1, 1]} : vector<8x256xf32> to vector<8x64xf32>
    %232 = math.tanh %231 : vector<8x64xf32>
    %233 = vector.extract_strided_slice %230 {offsets = [0, 64], sizes = [8, 64], strides = [1, 1]} : vector<8x128xf32> to vector<8x64xf32>
    %234 = arith.mulf %233, %211 : vector<8x64xf32>
    %235 = vector.extract_strided_slice %230 {offsets = [0, 0], sizes = [8, 64], strides = [1, 1]} : vector<8x128xf32> to vector<8x64xf32>
    %236 = arith.mulf %235, %232 : vector<8x64xf32>
    %237 = arith.addf %234, %236 : vector<8x64xf32>
    %238 = math.tanh %237 : vector<8x64xf32>
    %239 = vector.extract_strided_slice %224 {offsets = [0, 192], sizes = [8, 64], strides = [1, 1]} : vector<8x256xf32> to vector<8x64xf32>
    %240 = arith.negf %239 : vector<8x64xf32>
    %241 = math.exp %240 : vector<8x64xf32>
    %cst_66 = arith.constant 1.000000e+00 : f32
    %242 = vector.broadcast %cst_66 : f32 to vector<8x64xf32>
    %243 = arith.addf %242, %241 : vector<8x64xf32>
    %244 = arith.divf %242, %243 : vector<8x64xf32>
    %245 = arith.mulf %244, %238 : vector<8x64xf32>
    %c72 = arith.constant 72 : index
    %c0_67 = arith.constant 0 : index
    %246 = vector.load %arg9[%c72, %c0_67] : memref<96x256xf32, #tpu.memory_space<vmem>>, vector<8x256xf32>
    %247 = arith.truncf %245 : vector<8x64xf32> to vector<8x64xbf16>
    %c0_68 = arith.constant 0 : index
    %c0_69 = arith.constant 0 : index
    %248 = vector.load %arg10[%c0_68, %c0_69] : memref<64x256xbf16, #tpu.memory_space<vmem>>, vector<64x256xbf16>
    %cst_70 = arith.constant dense<0.000000e+00> : vector<8x256xf32>
    %249 = tpu.matmul %247, %248, %cst_70 {dimension_numbers = #tpu.dot_dimension_numbers<[1], [0], [0], [1], [0, 0, 1, 1], [], []>} : vector<8x64xbf16>, vector<64x256xbf16>, vector<8x256xf32> -> vector<8x256xf32>
    %250 = arith.addf %246, %249 : vector<8x256xf32>
    %251 = vector.extract_strided_slice %250 {offsets = [0, 0], sizes = [8, 128], strides = [1, 1]} : vector<8x256xf32> to vector<8x128xf32>
    %252 = arith.negf %251 : vector<8x128xf32>
    %253 = math.exp %252 : vector<8x128xf32>
    %cst_71 = arith.constant 1.000000e+00 : f32
    %254 = vector.broadcast %cst_71 : f32 to vector<8x128xf32>
    %255 = arith.addf %254, %253 : vector<8x128xf32>
    %256 = arith.divf %254, %255 : vector<8x128xf32>
    %257 = vector.extract_strided_slice %250 {offsets = [0, 128], sizes = [8, 64], strides = [1, 1]} : vector<8x256xf32> to vector<8x64xf32>
    %258 = math.tanh %257 : vector<8x64xf32>
    %259 = vector.extract_strided_slice %256 {offsets = [0, 64], sizes = [8, 64], strides = [1, 1]} : vector<8x128xf32> to vector<8x64xf32>
    %260 = arith.mulf %259, %237 : vector<8x64xf32>
    %261 = vector.extract_strided_slice %256 {offsets = [0, 0], sizes = [8, 64], strides = [1, 1]} : vector<8x128xf32> to vector<8x64xf32>
    %262 = arith.mulf %261, %258 : vector<8x64xf32>
    %263 = arith.addf %260, %262 : vector<8x64xf32>
    %264 = math.tanh %263 : vector<8x64xf32>
    %265 = vector.extract_strided_slice %250 {offsets = [0, 192], sizes = [8, 64], strides = [1, 1]} : vector<8x256xf32> to vector<8x64xf32>
    %266 = arith.negf %265 : vector<8x64xf32>
    %267 = math.exp %266 : vector<8x64xf32>
    %cst_72 = arith.constant 1.000000e+00 : f32
    %268 = vector.broadcast %cst_72 : f32 to vector<8x64xf32>
    %269 = arith.addf %268, %267 : vector<8x64xf32>
    %270 = arith.divf %268, %269 : vector<8x64xf32>
    %271 = arith.mulf %270, %264 : vector<8x64xf32>
    %c80 = arith.constant 80 : index
    %c0_73 = arith.constant 0 : index
    %272 = vector.load %arg9[%c80, %c0_73] : memref<96x256xf32, #tpu.memory_space<vmem>>, vector<8x256xf32>
    %273 = arith.truncf %271 : vector<8x64xf32> to vector<8x64xbf16>
    %c0_74 = arith.constant 0 : index
    %c0_75 = arith.constant 0 : index
    %274 = vector.load %arg10[%c0_74, %c0_75] : memref<64x256xbf16, #tpu.memory_space<vmem>>, vector<64x256xbf16>
    %cst_76 = arith.constant dense<0.000000e+00> : vector<8x256xf32>
    %275 = tpu.matmul %273, %274, %cst_76 {dimension_numbers = #tpu.dot_dimension_numbers<[1], [0], [0], [1], [0, 0, 1, 1], [], []>} : vector<8x64xbf16>, vector<64x256xbf16>, vector<8x256xf32> -> vector<8x256xf32>
    %276 = arith.addf %272, %275 : vector<8x256xf32>
    %277 = vector.extract_strided_slice %276 {offsets = [0, 0], sizes = [8, 128], strides = [1, 1]} : vector<8x256xf32> to vector<8x128xf32>
    %278 = arith.negf %277 : vector<8x128xf32>
    %279 = math.exp %278 : vector<8x128xf32>
    %cst_77 = arith.constant 1.000000e+00 : f32
    %280 = vector.broadcast %cst_77 : f32 to vector<8x128xf32>
    %281 = arith.addf %280, %279 : vector<8x128xf32>
    %282 = arith.divf %280, %281 : vector<8x128xf32>
    %283 = vector.extract_strided_slice %276 {offsets = [0, 128], sizes = [8, 64], strides = [1, 1]} : vector<8x256xf32> to vector<8x64xf32>
    %284 = math.tanh %283 : vector<8x64xf32>
    %285 = vector.extract_strided_slice %282 {offsets = [0, 64], sizes = [8, 64], strides = [1, 1]} : vector<8x128xf32> to vector<8x64xf32>
    %286 = arith.mulf %285, %263 : vector<8x64xf32>
    %287 = vector.extract_strided_slice %282 {offsets = [0, 0], sizes = [8, 64], strides = [1, 1]} : vector<8x128xf32> to vector<8x64xf32>
    %288 = arith.mulf %287, %284 : vector<8x64xf32>
    %289 = arith.addf %286, %288 : vector<8x64xf32>
    %290 = math.tanh %289 : vector<8x64xf32>
    %291 = vector.extract_strided_slice %276 {offsets = [0, 192], sizes = [8, 64], strides = [1, 1]} : vector<8x256xf32> to vector<8x64xf32>
    %292 = arith.negf %291 : vector<8x64xf32>
    %293 = math.exp %292 : vector<8x64xf32>
    %cst_78 = arith.constant 1.000000e+00 : f32
    %294 = vector.broadcast %cst_78 : f32 to vector<8x64xf32>
    %295 = arith.addf %294, %293 : vector<8x64xf32>
    %296 = arith.divf %294, %295 : vector<8x64xf32>
    %297 = arith.mulf %296, %290 : vector<8x64xf32>
    %c88 = arith.constant 88 : index
    %c0_79 = arith.constant 0 : index
    %298 = vector.load %arg9[%c88, %c0_79] : memref<96x256xf32, #tpu.memory_space<vmem>>, vector<8x256xf32>
    %299 = arith.truncf %297 : vector<8x64xf32> to vector<8x64xbf16>
    %c0_80 = arith.constant 0 : index
    %c0_81 = arith.constant 0 : index
    %300 = vector.load %arg10[%c0_80, %c0_81] : memref<64x256xbf16, #tpu.memory_space<vmem>>, vector<64x256xbf16>
    %cst_82 = arith.constant dense<0.000000e+00> : vector<8x256xf32>
    %301 = tpu.matmul %299, %300, %cst_82 {dimension_numbers = #tpu.dot_dimension_numbers<[1], [0], [0], [1], [0, 0, 1, 1], [], []>} : vector<8x64xbf16>, vector<64x256xbf16>, vector<8x256xf32> -> vector<8x256xf32>
    %302 = arith.addf %298, %301 : vector<8x256xf32>
    %303 = vector.extract_strided_slice %302 {offsets = [0, 0], sizes = [8, 128], strides = [1, 1]} : vector<8x256xf32> to vector<8x128xf32>
    %304 = arith.negf %303 : vector<8x128xf32>
    %305 = math.exp %304 : vector<8x128xf32>
    %cst_83 = arith.constant 1.000000e+00 : f32
    %306 = vector.broadcast %cst_83 : f32 to vector<8x128xf32>
    %307 = arith.addf %306, %305 : vector<8x128xf32>
    %308 = arith.divf %306, %307 : vector<8x128xf32>
    %309 = vector.extract_strided_slice %302 {offsets = [0, 128], sizes = [8, 64], strides = [1, 1]} : vector<8x256xf32> to vector<8x64xf32>
    %310 = math.tanh %309 : vector<8x64xf32>
    %311 = vector.extract_strided_slice %308 {offsets = [0, 64], sizes = [8, 64], strides = [1, 1]} : vector<8x128xf32> to vector<8x64xf32>
    %312 = arith.mulf %311, %289 : vector<8x64xf32>
    %313 = vector.extract_strided_slice %308 {offsets = [0, 0], sizes = [8, 64], strides = [1, 1]} : vector<8x128xf32> to vector<8x64xf32>
    %314 = arith.mulf %313, %310 : vector<8x64xf32>
    %315 = arith.addf %312, %314 : vector<8x64xf32>
    %316 = math.tanh %315 : vector<8x64xf32>
    %317 = vector.extract_strided_slice %302 {offsets = [0, 192], sizes = [8, 64], strides = [1, 1]} : vector<8x256xf32> to vector<8x64xf32>
    %318 = arith.negf %317 : vector<8x64xf32>
    %319 = math.exp %318 : vector<8x64xf32>
    %cst_84 = arith.constant 1.000000e+00 : f32
    %320 = vector.broadcast %cst_84 : f32 to vector<8x64xf32>
    %321 = arith.addf %320, %319 : vector<8x64xf32>
    %322 = arith.divf %320, %321 : vector<8x64xf32>
    %323 = arith.mulf %322, %316 : vector<8x64xf32>
    %c0_85 = arith.constant 0 : index
    %c0_86 = arith.constant 0 : index
    %324 = vector.load %arg4[%c0_85, %c0_86] : memref<64x64xf32, #tpu.memory_space<vmem>>, vector<64x64xf32>
    %cst_87 = arith.constant dense<0.000000e+00> : vector<8x64xf32>
    %325 = tpu.matmul %323, %324, %cst_87 {dimension_numbers = #tpu.dot_dimension_numbers<[1], [0], [0], [1], [0, 0, 1, 1], [], []>} : vector<8x64xf32>, vector<64x64xf32>, vector<8x64xf32> -> vector<8x64xf32>
    %cst_88 = arith.constant dense<0.000000e+00> : vector<64xf32>
    %326 = vector.multi_reduction <add>, %325, %cst_88 [0] : vector<8x64xf32> to vector<64xf32>
    %327 = vector.shape_cast %326 : vector<64xf32> to vector<1x64xf32>
    %cst_89 = arith.constant 8.000000e+00 : f32
    %328 = vector.broadcast %cst_89 : f32 to vector<1x64xf32>
    %329 = arith.divf %327, %328 : vector<1x64xf32>
    %330 = vector.broadcast %329 : vector<1x64xf32> to vector<8x64xf32>
    %331 = arith.subf %325, %330 : vector<8x64xf32>
    %332 = arith.mulf %331, %331 : vector<8x64xf32>
    %cst_90 = arith.constant dense<0.000000e+00> : vector<64xf32>
    %333 = vector.multi_reduction <add>, %332, %cst_90 [0] : vector<8x64xf32> to vector<64xf32>
    %334 = vector.shape_cast %333 : vector<64xf32> to vector<1x64xf32>
    %cst_91 = arith.constant 8.000000e+00 : f32
    %335 = vector.broadcast %cst_91 : f32 to vector<1x64xf32>
    %336 = arith.divf %334, %335 : vector<1x64xf32>
    %337 = vector.broadcast %329 : vector<1x64xf32> to vector<8x64xf32>
    %338 = arith.subf %325, %337 : vector<8x64xf32>
    %cst_92 = arith.constant 9.99999974E-6 : f32
    %339 = vector.broadcast %cst_92 : f32 to vector<1x64xf32>
    %340 = arith.addf %336, %339 : vector<1x64xf32>
    %341 = math.rsqrt %340 : vector<1x64xf32>
    %342 = vector.broadcast %341 : vector<1x64xf32> to vector<8x64xf32>
    %343 = arith.mulf %338, %342 : vector<8x64xf32>
    %c0_93 = arith.constant 0 : index
    %c0_94 = arith.constant 0 : index
    %344 = vector.load %arg5[%c0_93, %c0_94] : memref<2x64xf32, #tpu.memory_space<vmem>>, vector<1x64xf32>
    %345 = vector.broadcast %344 : vector<1x64xf32> to vector<8x64xf32>
    %346 = arith.mulf %343, %345 : vector<8x64xf32>
    %c1 = arith.constant 1 : index
    %c0_95 = arith.constant 0 : index
    %347 = vector.load %arg5[%c1, %c0_95] : memref<2x64xf32, #tpu.memory_space<vmem>>, vector<1x64xf32>
    %348 = vector.broadcast %347 : vector<1x64xf32> to vector<8x64xf32>
    %349 = arith.addf %346, %348 : vector<8x64xf32>
    %cst_96 = arith.constant 0.000000e+00 : f32
    %350 = vector.broadcast %cst_96 : f32 to vector<8x64xf32>
    %351 = arith.maximumf %349, %350 : vector<8x64xf32>
    %c0_97 = arith.constant 0 : index
    %c0_98 = arith.constant 0 : index
    %352 = vector.load %arg6[%c0_97, %c0_98] : memref<64x1xf32, #tpu.memory_space<vmem>>, vector<64x1xf32>
    %cst_99 = arith.constant dense<0.000000e+00> : vector<8x1xf32>
    %353 = tpu.matmul %351, %352, %cst_99 {dimension_numbers = #tpu.dot_dimension_numbers<[1], [0], [0], [1], [0, 0, 1, 1], [], []>} : vector<8x64xf32>, vector<64x1xf32>, vector<8x1xf32> -> vector<8x1xf32>
    %cst_100 = arith.constant dense<0.000000e+00> : vector<1xf32>
    %354 = vector.multi_reduction <add>, %353, %cst_100 [0] : vector<8x1xf32> to vector<1xf32>
    %355 = vector.shape_cast %354 : vector<1xf32> to vector<1x1xf32>
    %cst_101 = arith.constant 8.000000e+00 : f32
    %356 = vector.broadcast %cst_101 : f32 to vector<1x1xf32>
    %357 = arith.divf %355, %356 : vector<1x1xf32>
    %358 = vector.broadcast %357 : vector<1x1xf32> to vector<8x1xf32>
    %359 = arith.subf %353, %358 : vector<8x1xf32>
    %360 = arith.mulf %359, %359 : vector<8x1xf32>
    %cst_102 = arith.constant dense<0.000000e+00> : vector<1xf32>
    %361 = vector.multi_reduction <add>, %360, %cst_102 [0] : vector<8x1xf32> to vector<1xf32>
    %362 = vector.shape_cast %361 : vector<1xf32> to vector<1x1xf32>
    %cst_103 = arith.constant 8.000000e+00 : f32
    %363 = vector.broadcast %cst_103 : f32 to vector<1x1xf32>
    %364 = arith.divf %362, %363 : vector<1x1xf32>
    %365 = vector.broadcast %357 : vector<1x1xf32> to vector<8x1xf32>
    %366 = arith.subf %353, %365 : vector<8x1xf32>
    %cst_104 = arith.constant 9.99999974E-6 : f32
    %367 = vector.broadcast %cst_104 : f32 to vector<1x1xf32>
    %368 = arith.addf %364, %367 : vector<1x1xf32>
    %369 = math.rsqrt %368 : vector<1x1xf32>
    %370 = vector.broadcast %369 : vector<1x1xf32> to vector<8x1xf32>
    %371 = arith.mulf %366, %370 : vector<8x1xf32>
    %c0_105 = arith.constant 0 : index
    %372 = memref.load %arg7[%c0_105] : memref<2xf32, #tpu.memory_space<smem>>
    %373 = vector.broadcast %372 : f32 to vector<8x1xf32>
    %374 = arith.mulf %371, %373 : vector<8x1xf32>
    %c1_106 = arith.constant 1 : index
    %375 = memref.load %arg7[%c1_106] : memref<2xf32, #tpu.memory_space<smem>>
    %376 = vector.broadcast %375 : f32 to vector<8x1xf32>
    %377 = arith.addf %374, %376 : vector<8x1xf32>
    %cst_107 = arith.constant 0.000000e+00 : f32
    %378 = vector.broadcast %cst_107 : f32 to vector<8x1xf32>
    %379 = arith.maximumf %377, %378 : vector<8x1xf32>
    %c0_108 = arith.constant 0 : index
    %c0_109 = arith.constant 0 : index
    %380 = vector.load %arg8[%c0_108, %c0_109] : memref<8x1xf32, #tpu.memory_space<vmem>>, vector<8x1xf32>
    tpu.vector_store %arg8[%c0_108, %c0_109], %379 {strides = array<i32>} : memref<8x1xf32, #tpu.memory_space<vmem>>, vector<8x1xf32>,
    return
  }
  func.func @transform_0(%arg0: i32) -> (i32, i32) {
    %c0_i32 = arith.constant 0 : i32
    %c0_i32_0 = arith.constant 0 : i32
    %c0_i32_1 = arith.constant 0 : i32
    return %c0_i32, %c0_i32_0 : i32, i32
  }
  func.func @transform_1(%arg0: i32) -> (i32, i32) {
    %c0_i32 = arith.constant 0 : i32
    %c0_i32_0 = arith.constant 0 : i32
    %c0_i32_1 = arith.constant 0 : i32
    return %c0_i32, %c0_i32_0 : i32, i32
  }
  func.func @transform_2(%arg0: i32) -> (i32, i32) {
    %c0_i32 = arith.constant 0 : i32
    %c0_i32_0 = arith.constant 0 : i32
    %c0_i32_1 = arith.constant 0 : i32
    return %c0_i32, %c0_i32_0 : i32, i32
  }
  func.func @transform_3(%arg0: i32) -> (i32, i32) {
    %c0_i32 = arith.constant 0 : i32
    %c0_i32_0 = arith.constant 0 : i32
    %c0_i32_1 = arith.constant 0 : i32
    return %c0_i32, %c0_i32_0 : i32, i32
  }
  func.func @transform_4(%arg0: i32) -> (i32, i32) {
    %c0_i32 = arith.constant 0 : i32
    %c0_i32_0 = arith.constant 0 : i32
    %c0_i32_1 = arith.constant 0 : i32
    return %c0_i32, %c0_i32_0 : i32, i32
  }
  func.func @transform_5(%arg0: i32) -> (i32, i32) {
    %c0_i32 = arith.constant 0 : i32
    %c0_i32_0 = arith.constant 0 : i32
    %c0_i32_1 = arith.constant 0 : i32
    return %c0_i32, %c0_i32_0 : i32, i32
  }
  func.func @transform_6(%arg0: i32) -> i32 {
    %c0_i32 = arith.constant 0 : i32
    %c0_i32_0 = arith.constant 0 : i32
    return %c0_i32 : i32
  }
  func.func @transform_7(%arg0: i32) -> (i32, i32) {
    %c0_i32 = arith.constant 0 : i32
    %c0_i32_0 = arith.constant 0 : i32
    %c0_i32_1 = arith.constant 0 : i32
    return %c0_i32, %c0_i32_0 : i32, i32
  }
}

</mosaic_0001>

<bundles_post_ra>
// kernel: tpu_custom_call.1
= control target key start
LH: loop header
LB: loop body
LE: loop exit
PB: predicated region body
PF: predicated region fallthrough
CT: control target
= control target key end

     0   :  { %12 = vsyncpa [#allocation5], 0  ;;  %s2236_s0 = inlined_call_operand.vmem [shape: f32[96,3], index: 0, kind: input, shape index: {}]   ;;  %s2237_s1 = inlined_call_operand.vmem [shape: f32[4,256], index: 1, kind: input, shape index: {}]   ;;  %s2238_s2 = inlined_call_operand.vmem [shape: f32[64,256], index: 2, kind: input, shape index: {}]   ;;  %s2239_s3 = inlined_call_operand.hbm [shape: f32[64,64], index: 3, kind: input, shape index: {}]   ;;  %s2240_s4 = inlined_call_operand.vmem [shape: f32[2,64], index: 4, kind: input, shape index: {}]   ;;  %s2241_s5 = inlined_call_operand.vmem [shape: f32[64,1], index: 5, kind: input, shape index: {}]   ;;  %s2242_s6 = inlined_call_operand.vmem [shape: f32[2], index: 6, kind: input, shape index: {}]   ;;  %s2243_s7 = inlined_call_operand.vmem [shape: f32[8,1], index: 7, kind: output, shape index: {}]  }
   0x1   :  { %13 = vsyncpa [#allocation6], 0  ;;  %s1776_s24 = smov [#allocation4]   ;;  %s42_s28 = sshll.u32 %s2242_s6, 4  ;;  %s43_s28 = int_to_ptr.vmem [resolvable:$true] %s42_s28 }
   0x2   :  { %s25_s25 = sshll.u32 %s1776_s24, 4  ;;  %s1738_s8 = scalar_lea.hbm %s2239_s3, 1024  ;;  %s26_s25 = int_to_ptr.vmem [resolvable:$true] %s25_s25 }
   0x3   :  { %p1739_p0 = scmp.ne.s32.totalorder %s2239_s3, %s1738_s8  ;;  %p1742_p1 = scmp.lt.u32.totalorder %s1738_s8, %s2239_s3 }
   0x5   :  { %p1744_p2 = pnand %p1742_p1, %p1739_p0 }
   0x7   :  { %1747 = shalt.err (!%p1744_p2)
}
   0x8   :  { %s1748_s13 = scalar_lea.vmem %s26_s25, 1024  ;;  %p1753_p4 = scmp.lt.s32.totalorder %s26_s25, %s26_s25 }
   0x9   :  { %p1749_p3 = scmp.ne.s32.totalorder %s26_s25, %s1748_s13  ;;  %p1754_p5 = scmp.lt.s32.totalorder %s1748_s13, %s1748_s13 }
   0xb   :  { %p1755_p6 = por %p1754_p5, %p1753_p4 }
   0xd   :  { %p1756_p7 = pnand %p1755_p6, %p1749_p3 }
   0xf   :  { %1759 = shalt.err (!%p1756_p7)
}
  0x10   :  { %s1777_s6 = smov 128   ;;  %s1778_s14 = smov 8  }
  0x11   :  { %31 = dma.hbm_to_vmem [thread:$0]  %s2239_s3, 1024, %s26_s25, [#allocation5], %s1777_s6, %s1777_s6, %s1778_s14  }
  0x12   :  { %s1760_s17 = scalar_lea.vmem %s43_s28, 16  ;;  %p1765_p9 = scmp.lt.s32.totalorder %s43_s28, %s43_s28 }
  0x13   :  { %p1761_p8 = scmp.ne.s32.totalorder %s43_s28, %s1760_s17  ;;  %p1766_p10 = scmp.lt.s32.totalorder %s1760_s17, %s1760_s17 }
  0x15   :  { %p1767_p11 = por %p1766_p10, %p1765_p9 }
  0x17   :  { %p1768_p12 = pnand %p1767_p11, %p1761_p8 }
  0x19   :  { %1771 = shalt.err (!%p1768_p12)
}
  0x1a   :  { %s1779_s18 = smov [#allocation7]  }
  0x1b   :  { %45 = dma.vmem_to_smem %s43_s28, 16, %s1779_s18, [#allocation6]  }
  0x1c   :  { %1772 = dma.done.wait [#allocation5], 1024  }
  0x1d   :  { %1773 = vsyncadd [#allocation5], 4294966272 }
  0x1e   :  { %1774 = dma.done.wait [#allocation6], 16  }
  0x1f   :  { %1775 = vsyncadd [#allocation6], 4294967280 }
  0x20   :  { %52 = sfence }
  0x21   :  { %v286_v0 = vld [vmem:[%s2238_s2 + $0x8] sm:$0xff]  ;;  %v288_v1 = vld [vmem:[%s2238_s2 + $0x18] sm:$0xff]  ;;  %v285_v2 = vld [vmem:[%s2238_s2] sm:$0xff]  ;;  %v1780_v7 = vmov 0.0   ;;  %v1781_v13 = vmov 0   ;;  %vm119_vm0 = vcmask 1042432   ;;  %v70_v29 = vlaneseq }
  0x22   :  { %v1849_v3 = vpack.c.bf16 %v288_v1, %v286_v0  ;;  %v287_v4 = vld [vmem:[%s2238_s2 + $0x10] sm:$0xff]  ;;  %v290_v5 = vld [vmem:[%s2238_s2 + $0x28] sm:$0xff]  ;;  %v292_v6 = vld [vmem:[%s2238_s2 + $0x38] sm:$0xff]  ;;  %188 = vmatprep.mubr.f32.mxu0 %v1780_v7  ;;  %363 = vmatprep.mubr.bf16.mxu1 %v1781_v13  ;;  %vm82_vm1 = vcmask 23552   ;;  %vm327_vm2 = vcmask 523264   ;;  %vm1784_vm3 = vmmov 0  }
  0x23   :  { %v1861_v8 = vpack.c.bf16 %v287_v4, %v285_v2  ;;  %v1863_v9 = vpack.c.bf16 %v292_v6, %v290_v5  ;;  %v289_v10 = vld [vmem:[%s2238_s2 + $0x20] sm:$0xff]  ;;  %v291_v11 = vld [vmem:[%s2238_s2 + $0x30] sm:$0xff]  ;;  %v294_v12 = vld [vmem:[%s2238_s2 + $0x48] sm:$0xff]  ;;  %v71_v30 = vshrl.u32 %v70_v29, 7  ;;  %vm1409_vm4 = vcmask 7168   ;;  %s1499_s19 = sld [smem:[#allocation7 + $0x1]] }
  0x24   :  { %331 = vmatprep.subr.bf16.mxu1 %v1849_v3  ;;  %v296_v14 = vld [vmem:[%s2238_s2 + $0x58] sm:$0xff]  ;;  %v1880_v15 = vpack.c.bf16 %v291_v11, %v289_v10  ;;  %v66_v16 = vld [vmem:[%s2237_s1] sm:$0x77]  ;;  %v295_v19 = vld [vmem:[%s2238_s2 + $0x50] sm:$0xff] }
  0x25   :  { %332 = vmatpush1.bf16.msra.mxu1 %v1861_v8  ;;  %v1886_v17 = vpack.c.bf16 %v296_v14, %v294_v12  ;;  %v293_v18 = vld [vmem:[%s2238_s2 + $0x40] sm:$0xff]  ;;  %v81_v20 = vcombine.high %v66_v16, %v66_v16  ;;  %v298_v21 = vld [vmem:[%s2238_s2 + $0x68] sm:$0xff]  ;;  %v300_v22 = vld [vmem:[%s2238_s2 + $0x78] sm:$0xff]  ;;  %v72_v31 = vsub.s32 0, %v71_v30  ;;  %v76_v34 = vsub.s32 1, %v71_v30 }
  0x26   :  { %333 = vmatprep.subr.bf16.mxu1 %v1863_v9  ;;  %v54_v23 = vld [vmem:[%s2236_s0] sm:$0xff]  ;;  %v1904_v24 = vpack.c.bf16 %v295_v19, %v293_v18  ;;  %v1907_v25 = vpack.c.bf16 %v300_v22, %v298_v21  ;;  %v299_v27 = vld [vmem:[%s2238_s2 + $0x70] sm:$0xff]  ;;  %v55_v52 = vld [vmem:[%s2236_s0 + $0x8] sm:$0xff] }
  0x27   :  { %1446 = vmatprep.subr.msk.mxu0 %vm119_vm0, %v81_v20  ;;  %v297_v26 = vld [vmem:[%s2238_s2 + $0x60] sm:$0xff] }
  0x28   :  { %1447 = vmatpush1.msk.msra.mxu0 %vm119_vm0, %v66_v16  ;;  %v1920_v28 = vpack.c.bf16 %v299_v27, %v297_v26  ;;  %v1445_v32 = vld [vmem:[%s2237_s1 + $0x3] ss:$4 sm:$0x3]  ;;  %s1782_s1 = smov 64  }
  0x29   :  { %334 = vmatpush1.bf16.msra.mxu1 %v1880_v15  ;;  %1448 = vmatmul.mubr.msk.f32.vlgmr.msra.gmra.mrb[0].mxu0 %vm82_vm1, %v54_v23  ;;  %v1945_v36 = vrot.slane %v1445_v32, %v72_v31  ;;  %v1947_v37 = vrot.slane %v1445_v32, %v76_v34  ;;  %v56_v23 = vld [vmem:[%s2236_s0 + $0x10] sm:$0xff] }
  0x2a   :  { %335 = vmatprep.subr.bf16.mxu1 %v1886_v17  ;;  %194 = vmatprep.mubr.f32.mxu0 %v1780_v7 }
  0x2b   :  { %553 = vmatprep.subr.bf16.mxu0 %v1849_v3 }
  0x2c   :  { %554 = vmatpush1.bf16.msra.mxu0 %v1861_v8 }
  0x2d   :  { %336 = vmatpush1.bf16.msra.mxu1 %v1904_v24  ;;  %555 = vmatprep.subr.bf16.mxu0 %v1863_v9 }
  0x2e   :  { %337 = vmatprep.subr.bf16.mxu1 %v1907_v25  ;;  %1449 = vmatmul.mubr.msk.f32.gmra.mrb[2].mxu0 %vm82_vm1, %v55_v52 }
  0x2f   :  { %200 = vmatprep.mubr.f32.mxu0 %v1780_v7 }
  0x30   :  { %556 = vmatpush1.bf16.msra.mxu0 %v1880_v15 }
  0x31   :  { %338 = vmatpush1.bf16.msra.mxu1 %v1920_v28  ;;  %557 = vmatprep.subr.bf16.mxu0 %v1886_v17 }
  0x32   :  { %405 = vmatprep.subr.bf16.mxu1 %v1849_v3  ;;  %1450 = vmatmul.mubr.msk.f32.gmra.mrb[4].mxu0 %vm82_vm1, %v56_v23 }
  0x33   :  { %206 = vmatprep.mubr.f32.mxu0 %v1780_v7 }
  0x34   :  { %364 = vmatmul.mubr.bf16.vlgmr.msra.gmra.mrb[0].mxu1 %v1781_v13  ;;  %558 = vmatpush1.bf16.msra.mxu0 %v1904_v24 }
  0x35   :  { %406 = vmatpush1.bf16.msra.mxu1 %v1861_v8  ;;  %437 = vmatprep.mubr.bf16.mxu1 %v1781_v13 }
  0x36   :  { %407 = vmatprep.subr.bf16.mxu1 %v1863_v9  ;;  %559 = vmatprep.subr.bf16.mxu0 %v1907_v25 }
  0x38   :  { %560 = vmatpush1.bf16.msra.mxu0 %v1920_v28 }
  0x39   :  { %408 = vmatpush1.bf16.msra.mxu1 %v1880_v15  ;;  %701 = vmatprep.subr.bf16.mxu0 %v1849_v3 }
  0x3a   :  { %409 = vmatprep.subr.bf16.mxu1 %v1886_v17 }
  0x3d   :  { %410 = vmatpush1.bf16.msra.mxu1 %v1904_v24 }
  0x3e   :  { %411 = vmatprep.subr.bf16.mxu1 %v1907_v25 }
  0x41   :  { %412 = vmatpush1.bf16.msra.mxu1 %v1920_v28 }
  0x42   :  { %479 = vmatprep.subr.bf16.mxu1 %v1849_v3 }
  0xfc   :  { %v190_v33 = vpop.f32.mrb[0].mxu0 }
  0xfd   :  { %v192_v35 = vpop.f32.mrb[1].mxu0  ;;  %v191_v38 = vadd.f32 %v190_v33, %v1945_v36 }
  0xfe   :  { %v193_v39 = vadd.f32 %v192_v35, %v1947_v37 }
 0x101   :  { %v196_v63 = vpop.f32.mrb[2].mxu0 }
 0x102   :  { %v198_v0 = vpop.f32.mrb[3].mxu0  ;;  %v197_v2 = vadd.f32 %v196_v63, %v1945_v36  ;;  %v64_v63 = vld [vmem:[%s2236_s0 + $0x50] sm:$0xff] }
 0x103   :  { %v199_v4 = vadd.f32 %v198_v0, %v1947_v37  ;;  %v65_v0 = vld [vmem:[%s2236_s0 + $0x58] sm:$0xff] }
 0x107   :  { %v365_v40 = vpop.f32.mrb[0].mxu1 }
 0x108   :  { %v372_v41 = vadd.f32 %v365_v40, %v191_v38  ;;  %v367_v42 = vpop.f32.mrb[1].mxu1 }
 0x109   :  { %v373_v43 = vadd.f32 %v367_v42, %v193_v39  ;;  %v369_v44 = vpop.f32.mrb[2].mxu1  ;;  %v202_v39 = vpop.f32.mrb[4].mxu0 }
 0x10a   :  { %v1460_v45 = vmul.f32 -1.442695, %v372_v41  ;;  %v370_v46 = vpop.f32.mrb[3].mxu1  ;;  %v204_v40 = vpop.f32.mrb[5].mxu0  ;;  %v203_v42 = vadd.f32 %v202_v39, %v1945_v36 }
 0x10b   :  { %v1461_v53 = vmul.f32 -1.442695, %v373_v43 }
 0x10c   :  { %1590 = vpow2.f32 %v1460_v45 }
 0x10d   :  { %1592 = vtanh.f32 %v373_v43  ;;  %v205_v43 = vadd.f32 %v204_v40, %v1947_v37 }
 0x116   :  { %v1591_v47 = vpop.eup %1590 }
 0x117   :  { %v377_v48 = vadd.f32 1.0, %v1591_v47  ;;  %v1593_v49 = vpop.eup %1592 }
 0x119   :  { %1594 = vrcp.f32 %v377_v48 }
 0x11a   :  { %1596 = vpow2.f32 %v1461_v53 }
 0x123   :  { %v1595_v50 = vpop.eup %1594 }
 0x124   :  { %v382_v51 = vmul.f32 %v1595_v50, %v1593_v49  ;;  %v1597_v54 = vpop.eup %1596  ;;  %v381_v56 = vmul.f32 0.0, %v1595_v50 }
 0x125   :  { %v392_v55 = vadd.f32 1.0, %v1597_v54 }
 0x126   :  { %384 = vrot.lane.b32.xlu0 %v382_v51, %s1782_s1 }
 0x127   :  { %1598 = vrcp.f32 %v392_v55 }
 0x131   :  { %v1599_v59 = vpop.eup %1598 }
 0x198   :  { %v385_v57 = vpop.permute.xlu0 %384 }
 0x199   :  { %v387_v58 = vadd.f32 %v385_v57, %v381_v56  ;;  %v57_v56 = vld [vmem:[%s2236_s0 + $0x18] sm:$0xff]  ;;  %v58_v57 = vld [vmem:[%s2236_s0 + $0x20] sm:$0xff] }
 0x19a   :  { %1451 = vmatmul.mubr.msk.f32.gmra.mrb[6].mxu0 %vm82_vm1, %v57_v56 }
 0x19b   :  { %1600 = vtanh.f32 %v387_v58  ;;  %212 = vmatprep.mubr.f32.mxu0 %v1780_v7 }
 0x19e   :  { %1452 = vmatmul.mubr.msk.f32.gmra.mrb[8].mxu0 %vm82_vm1, %v58_v57 }
 0x19f   :  { %218 = vmatprep.mubr.f32.mxu0 %v1780_v7 }
 0x1a5   :  { %v1601_v60 = vpop.eup %1600 }
 0x1a6   :  { %v395_v61 = vmul.f32 %v1601_v60, %v1599_v59  ;;  %v60_v59 = vld [vmem:[%s2236_s0 + $0x30] sm:$0xff]  ;;  %v61_v60 = vld [vmem:[%s2236_s0 + $0x38] sm:$0xff] }
 0x1a8   :  { %v398_v62 = vpack.c.bf16 %v395_v61, %v395_v61  ;;  %v62_v61 = vld [vmem:[%s2236_s0 + $0x40] sm:$0xff] }
 0x1aa   :  { %400 = vrot.lane.b32.xlu0 %v398_v62, %s1782_s1  ;;  %v63_v62 = vld [vmem:[%s2236_s0 + $0x48] sm:$0xff] }
 0x21c   :  { %v401_v1 = vpop.permute.xlu0 %400 }
 0x21d   :  { %1462 = vmatmul.mubr.msk.bf16.vlgmr.msra.gmra.mrb[4].mxu1 %vm327_vm2, %v401_v1 }
 0x21e   :  { %480 = vmatpush1.bf16.msra.mxu1 %v1861_v8  ;;  %511 = vmatprep.mubr.bf16.mxu1 %v1781_v13 }
 0x21f   :  { %481 = vmatprep.subr.bf16.mxu1 %v1863_v9 }
 0x222   :  { %482 = vmatpush1.bf16.msra.mxu1 %v1880_v15 }
 0x223   :  { %483 = vmatprep.subr.bf16.mxu1 %v1886_v17 }
 0x226   :  { %484 = vmatpush1.bf16.msra.mxu1 %v1904_v24 }
 0x227   :  { %485 = vmatprep.subr.bf16.mxu1 %v1907_v25 }
 0x22a   :  { %486 = vmatpush1.bf16.msra.mxu1 %v1920_v28 }
 0x22b   :  { %627 = vmatprep.subr.bf16.mxu1 %v1849_v3 }
 0x2f0   :  { %v439_v5 = vpop.f32.mrb[4].mxu1 }
 0x2f1   :  { %v446_v6 = vadd.f32 %v439_v5, %v197_v2  ;;  %v441_v10 = vpop.f32.mrb[5].mxu1 }
 0x2f2   :  { %v447_v11 = vadd.f32 %v441_v10, %v199_v4  ;;  %v443_v12 = vpop.f32.mrb[6].mxu1 }
 0x2f3   :  { %v1463_v14 = vmul.f32 -1.442695, %v446_v6  ;;  %v444_v16 = vpop.f32.mrb[7].mxu1 }
 0x2f4   :  { %v1464_v26 = vmul.f32 -1.442695, %v447_v11 }
 0x2f5   :  { %1602 = vpow2.f32 %v1463_v14 }
 0x2f6   :  { %1604 = vtanh.f32 %v447_v11 }
 0x2ff   :  { %v1603_v18 = vpop.eup %1602 }
 0x300   :  { %v451_v19 = vadd.f32 1.0, %v1603_v18  ;;  %v1605_v20 = vpop.eup %1604  ;;  %v208_v18 = vpop.f32.mrb[6].mxu0 }
 0x302   :  { %1606 = vrcp.f32 %v451_v19  ;;  %v210_v19 = vpop.f32.mrb[7].mxu0 }
 0x303   :  { %1608 = vpow2.f32 %v1464_v26 }
 0x30c   :  { %v1607_v21 = vpop.eup %1606 }
 0x30d   :  { %v456_v22 = vmul.f32 %v1607_v21, %v1605_v20  ;;  %v1609_v27 = vpop.eup %1608  ;;  %v455_v30 = vmul.f32 %v1607_v21, %v387_v58  ;;  %v59_v58 = vld [vmem:[%s2236_s0 + $0x28] sm:$0xff]  ;;  %v2040_v20 = vpop.f32.mrb[8].mxu0 }
 0x30e   :  { %v466_v29 = vadd.f32 1.0, %v1609_v27  ;;  %1453 = vmatmul.mubr.msk.f32.gmra.mrb[10].mxu0 %vm82_vm1, %v59_v58  ;;  %v2042_v21 = vpop.f32.mrb[9].mxu0 }
 0x30f   :  { %458 = vrot.lane.b32.xlu1 %v456_v22, %s1782_s1  ;;  %224 = vmatprep.mubr.f32.mxu0 %v1780_v7 }
 0x310   :  { %1610 = vrcp.f32 %v466_v29 }
 0x312   :  { %1454 = vmatmul.mubr.msk.f32.gmra.mrb[12].mxu0 %vm82_vm1, %v60_v59 }
 0x313   :  { %230 = vmatprep.mubr.f32.mxu0 %v1780_v7 }
 0x316   :  { %1455 = vmatmul.mubr.msk.f32.gmra.mrb[14].mxu0 %vm82_vm1, %v61_v60 }
 0x317   :  { %236 = vmatprep.mubr.f32.mxu0 %v1780_v7 }
 0x31a   :  { %v1611_v33 = vpop.eup %1610  ;;  %1456 = vmatmul.mubr.msk.f32.gmra.mrb[16].mxu0 %vm82_vm1, %v62_v61 }
 0x31b   :  { %242 = vmatprep.mubr.f32.mxu0 %v1780_v7 }
 0x31e   :  { %1457 = vmatmul.mubr.msk.f32.gmra.mrb[18].mxu0 %vm82_vm1, %v63_v62 }
 0x31f   :  { %248 = vmatprep.mubr.f32.mxu0 %v1780_v7 }
 0x322   :  { %1458 = vmatmul.mubr.msk.f32.gmra.mrb[20].mxu0 %vm82_vm1, %v64_v63 }
 0x323   :  { %254 = vmatprep.mubr.f32.mxu0 %v1780_v7 }
 0x326   :  { %1459 = vmatmul.mubr.msk.f32.gmra.mrb[22].mxu0 %vm82_vm1, %v65_v0 }
 0x327   :  { %585 = vmatprep.mubr.bf16.mxu0 %v1781_v13 }
 0x381   :  { %v459_v31 = vpop.permute.xlu1 %458 }
 0x382   :  { %v1976_v32 = vadd.f32 %v459_v31, %v455_v30 }
 0x384   :  { %1612 = vtanh.f32 %v1976_v32 }
 0x38e   :  { %v1613_v34 = vpop.eup %1612 }
 0x38f   :  { %v469_v35 = vmul.f32 %v1613_v34, %v1611_v33 }
 0x391   :  { %v472_v38 = vpack.c.bf16 %v469_v35, %v469_v35 }
 0x393   :  { %474 = vrot.lane.b32.xlu1 %v472_v38, %s1782_s1 }
 0x3e1   :  { %v2044_v22 = vpop.f32.mrb[10].mxu0 }
 0x3e2   :  { %v2046_v23 = vpop.f32.mrb[11].mxu0 }
 0x3e5   :  { %v2048_v26 = vpop.f32.mrb[12].mxu0 }
 0x3e6   :  { %v2050_v27 = vpop.f32.mrb[13].mxu0 }
 0x3e9   :  { %v2052_v29 = vpop.f32.mrb[14].mxu0 }
 0x3ea   :  { %v2054_v30 = vpop.f32.mrb[15].mxu0 }
 0x3ed   :  { %v2056_v31 = vpop.f32.mrb[16].mxu0 }
 0x405   :  { %v475_v41 = vpop.permute.xlu1 %474 }
 0x406   :  { %1465 = vmatmul.mubr.msk.bf16.vlgmr.msra.gmra.mrb[8].mxu1 %vm327_vm2, %v475_v41 }
 0x407   :  { %628 = vmatpush1.bf16.msra.mxu1 %v1861_v8  ;;  %659 = vmatprep.mubr.bf16.mxu1 %v1781_v13 }
 0x408   :  { %629 = vmatprep.subr.bf16.mxu1 %v1863_v9 }
 0x40b   :  { %630 = vmatpush1.bf16.msra.mxu1 %v1880_v15 }
 0x40c   :  { %631 = vmatprep.subr.bf16.mxu1 %v1886_v17 }
 0x40f   :  { %632 = vmatpush1.bf16.msra.mxu1 %v1904_v24 }
 0x410   :  { %633 = vmatprep.subr.bf16.mxu1 %v1907_v25 }
 0x413   :  { %634 = vmatpush1.bf16.msra.mxu1 %v1920_v28 }
 0x414   :  { %775 = vmatprep.subr.bf16.mxu1 %v1849_v3 }
 0x4d9   :  { %v513_v44 = vpop.f32.mrb[8].mxu1 }
 0x4da   :  { %v520_v45 = vadd.f32 %v513_v44, %v203_v42  ;;  %v515_v46 = vpop.f32.mrb[9].mxu1  ;;  %v209_v42 = vadd.f32 %v208_v18, %v1945_v36 }
 0x4db   :  { %v521_v47 = vadd.f32 %v515_v46, %v205_v43  ;;  %v517_v48 = vpop.f32.mrb[10].mxu1  ;;  %v211_v43 = vadd.f32 %v210_v19, %v1947_v37 }
 0x4dc   :  { %v1466_v49 = vmul.f32 -1.442695, %v520_v45  ;;  %v518_v50 = vpop.f32.mrb[11].mxu1 }
 0x4dd   :  { %v1467_v1 = vmul.f32 -1.442695, %v521_v47 }
 0x4de   :  { %1614 = vpow2.f32 %v1466_v49 }
 0x4df   :  { %1616 = vtanh.f32 %v521_v47 }
 0x4e8   :  { %v1615_v51 = vpop.eup %1614 }
 0x4e9   :  { %v525_v52 = vadd.f32 1.0, %v1615_v51  ;;  %v1617_v53 = vpop.eup %1616 }
 0x4eb   :  { %1618 = vrcp.f32 %v525_v52 }
 0x4ec   :  { %1620 = vpow2.f32 %v1467_v1 }
 0x4f5   :  { %v1619_v54 = vpop.eup %1618 }
 0x4f6   :  { %v530_v55 = vmul.f32 %v1619_v54, %v1617_v53  ;;  %v1621_v2 = vpop.eup %1620  ;;  %v529_v5 = vmul.f32 %v1619_v54, %v1976_v32  ;;  %v2058_v32 = vpop.f32.mrb[17].mxu0 }
 0x4f7   :  { %v540_v4 = vadd.f32 1.0, %v1621_v2  ;;  %v2060_v33 = vpop.f32.mrb[18].mxu0 }
 0x4f8   :  { %532 = vrot.lane.b32.xlu0 %v530_v55, %s1782_s1  ;;  %v2062_v34 = vpop.f32.mrb[19].mxu0 }
 0x4f9   :  { %1622 = vrcp.f32 %v540_v4  ;;  %v2064_v35 = vpop.f32.mrb[20].mxu0  ;;  %v215_v4 = vadd.f32 %v2040_v20, %v1945_v36 }
 0x4fa   :  { %v2066_v38 = vpop.f32.mrb[21].mxu0 }
 0x4fb   :  { %v2069_v40 = vpop.f32.mrb[22].mxu0 }
 0x4fc   :  { %v2073_v41 = vpop.f32.mrb[23].mxu0 }
 0x503   :  { %v1623_v11 = vpop.eup %1622 }
 0x56a   :  { %v533_v6 = vpop.permute.xlu0 %532 }
 0x56b   :  { %v535_v10 = vadd.f32 %v533_v6, %v529_v5  ;;  %v217_v5 = vadd.f32 %v2042_v21, %v1947_v37 }
 0x56d   :  { %1624 = vtanh.f32 %v535_v10 }
 0x577   :  { %v1625_v12 = vpop.eup %1624 }
 0x578   :  { %v543_v14 = vmul.f32 %v1625_v12, %v1623_v11 }
 0x57a   :  { %v546_v16 = vpack.c.bf16 %v543_v14, %v543_v14 }
 0x57c   :  { %548 = vrot.lane.b32.xlu1 %v546_v16, %s1782_s1 }
 0x5ee   :  { %v549_v39 = vpop.permute.xlu1 %548 }
 0x5ef   :  { %1468 = vmatmul.mubr.msk.bf16.vlgmr.msra.gmra.mrb[24].mxu0 %vm327_vm2, %v549_v39 }
 0x5f0   :  { %702 = vmatpush1.bf16.msra.mxu0 %v1861_v8  ;;  %733 = vmatprep.mubr.bf16.mxu0 %v1781_v13 }
 0x5f1   :  { %703 = vmatprep.subr.bf16.mxu0 %v1863_v9 }
 0x5f4   :  { %704 = vmatpush1.bf16.msra.mxu0 %v1880_v15 }
 0x5f5   :  { %705 = vmatprep.subr.bf16.mxu0 %v1886_v17 }
 0x5f8   :  { %706 = vmatpush1.bf16.msra.mxu0 %v1904_v24 }
 0x5f9   :  { %707 = vmatprep.subr.bf16.mxu0 %v1907_v25 }
 0x5fc   :  { %708 = vmatpush1.bf16.msra.mxu0 %v1920_v28 }
 0x5fd   :  { %849 = vmatprep.subr.bf16.mxu0 %v1849_v3 }
 0x6c2   :  { %v587_v44 = vpop.f32.mrb[24].mxu0 }
 0x6c3   :  { %v594_v45 = vadd.f32 %v587_v44, %v209_v42  ;;  %v589_v46 = vpop.f32.mrb[25].mxu0 }
 0x6c4   :  { %v595_v47 = vadd.f32 %v589_v46, %v211_v43  ;;  %v591_v48 = vpop.f32.mrb[26].mxu0 }
 0x6c5   :  { %v1469_v49 = vmul.f32 -1.442695, %v594_v45  ;;  %v592_v50 = vpop.f32.mrb[27].mxu0 }
 0x6c6   :  { %v1470_v56 = vmul.f32 -1.442695, %v595_v47 }
 0x6c7   :  { %1626 = vpow2.f32 %v1469_v49 }
 0x6c8   :  { %1628 = vtanh.f32 %v595_v47 }
 0x6d1   :  { %v1627_v51 = vpop.eup %1626 }
 0x6d2   :  { %v599_v52 = vadd.f32 1.0, %v1627_v51  ;;  %v1629_v53 = vpop.eup %1628 }
 0x6d4   :  { %1630 = vrcp.f32 %v599_v52 }
 0x6d5   :  { %1632 = vpow2.f32 %v1470_v56 }
 0x6de   :  { %v1631_v54 = vpop.eup %1630 }
 0x6df   :  { %v604_v55 = vmul.f32 %v1631_v54, %v1629_v53  ;;  %v1633_v57 = vpop.eup %1632  ;;  %v603_v59 = vmul.f32 %v1631_v54, %v535_v10  ;;  %v221_v54 = vadd.f32 %v2044_v22, %v1945_v36 }
 0x6e0   :  { %v614_v58 = vadd.f32 1.0, %v1633_v57 }
 0x6e1   :  { %606 = vrot.lane.b32.xlu0 %v604_v55, %s1782_s1  ;;  %v223_v55 = vadd.f32 %v2046_v23, %v1947_v37 }
 0x6e2   :  { %1634 = vrcp.f32 %v614_v58 }
 0x6ec   :  { %v1635_v62 = vpop.eup %1634 }
 0x753   :  { %v607_v60 = vpop.permute.xlu0 %606 }
 0x754   :  { %v609_v61 = vadd.f32 %v607_v60, %v603_v59 }
 0x756   :  { %1636 = vtanh.f32 %v609_v61 }
 0x760   :  { %v1637_v63 = vpop.eup %1636 }
 0x761   :  { %v617_v0 = vmul.f32 %v1637_v63, %v1635_v62 }
 0x763   :  { %v620_v1 = vpack.c.bf16 %v617_v0, %v617_v0 }
 0x765   :  { %622 = vrot.lane.b32.xlu1 %v620_v1, %s1782_s1 }
 0x7d7   :  { %v623_v2 = vpop.permute.xlu1 %622 }
 0x7d8   :  { %1471 = vmatmul.mubr.msk.bf16.vlgmr.msra.gmra.mrb[12].mxu1 %vm327_vm2, %v623_v2 }
 0x7d9   :  { %776 = vmatpush1.bf16.msra.mxu1 %v1861_v8  ;;  %807 = vmatprep.mubr.bf16.mxu1 %v1781_v13 }
 0x7da   :  { %777 = vmatprep.subr.bf16.mxu1 %v1863_v9 }
 0x7dd   :  { %778 = vmatpush1.bf16.msra.mxu1 %v1880_v15 }
 0x7de   :  { %779 = vmatprep.subr.bf16.mxu1 %v1886_v17 }
 0x7e1   :  { %780 = vmatpush1.bf16.msra.mxu1 %v1904_v24 }
 0x7e2   :  { %781 = vmatprep.subr.bf16.mxu1 %v1907_v25 }
 0x7e5   :  { %782 = vmatpush1.bf16.msra.mxu1 %v1920_v28 }
 0x7e6   :  { %923 = vmatprep.subr.bf16.mxu1 %v1849_v3 }
 0x8ab   :  { %v661_v6 = vpop.f32.mrb[12].mxu1 }
 0x8ac   :  { %v668_v10 = vadd.f32 %v661_v6, %v215_v4  ;;  %v663_v11 = vpop.f32.mrb[13].mxu1 }
 0x8ad   :  { %v669_v12 = vadd.f32 %v663_v11, %v217_v5  ;;  %v665_v14 = vpop.f32.mrb[14].mxu1 }
 0x8ae   :  { %v1472_v16 = vmul.f32 -1.442695, %v668_v10  ;;  %v666_v18 = vpop.f32.mrb[15].mxu1 }
 0x8af   :  { %v1473_v20 = vmul.f32 -1.442695, %v669_v12 }
 0x8b0   :  { %1638 = vpow2.f32 %v1472_v16 }
 0x8b1   :  { %1640 = vtanh.f32 %v669_v12 }
 0x8ba   :  { %v1639_v19 = vpop.eup %1638 }
 0x8bb   :  { %v673_v39 = vadd.f32 1.0, %v1639_v19  ;;  %v1641_v42 = vpop.eup %1640 }
 0x8bd   :  { %1642 = vrcp.f32 %v673_v39  ;;  %v227_v39 = vadd.f32 %v2048_v26, %v1945_v36 }
 0x8be   :  { %1644 = vpow2.f32 %v1473_v20 }
 0x8c7   :  { %v1643_v43 = vpop.eup %1642 }
 0x8c8   :  { %v678_v44 = vmul.f32 %v1643_v43, %v1641_v42  ;;  %v1645_v21 = vpop.eup %1644  ;;  %v677_v46 = vmul.f32 %v1643_v43, %v609_v61  ;;  %v229_v42 = vadd.f32 %v2050_v27, %v1947_v37 }
 0x8c9   :  { %v688_v45 = vadd.f32 1.0, %v1645_v21 }
 0x8ca   :  { %680 = vrot.lane.b32.xlu0 %v678_v44, %s1782_s1 }
 0x8cb   :  { %1646 = vrcp.f32 %v688_v45 }
 0x8d5   :  { %v1647_v49 = vpop.eup %1646 }
 0x93c   :  { %v681_v47 = vpop.permute.xlu0 %680 }
 0x93d   :  { %v683_v48 = vadd.f32 %v681_v47, %v677_v46 }
 0x93f   :  { %1648 = vtanh.f32 %v683_v48 }
 0x949   :  { %v1649_v50 = vpop.eup %1648 }
 0x94a   :  { %v691_v51 = vmul.f32 %v1649_v50, %v1647_v49 }
 0x94c   :  { %v694_v52 = vpack.c.bf16 %v691_v51, %v691_v51 }
 0x94e   :  { %696 = vrot.lane.b32.xlu1 %v694_v52, %s1782_s1 }
 0x9c0   :  { %v697_v53 = vpop.permute.xlu1 %696 }
 0x9c1   :  { %1474 = vmatmul.mubr.msk.bf16.vlgmr.msra.gmra.mrb[28].mxu0 %vm327_vm2, %v697_v53 }
 0x9c2   :  { %850 = vmatpush1.bf16.msra.mxu0 %v1861_v8  ;;  %881 = vmatprep.mubr.bf16.mxu0 %v1781_v13 }
 0x9c3   :  { %851 = vmatprep.subr.bf16.mxu0 %v1863_v9 }
 0x9c6   :  { %852 = vmatpush1.bf16.msra.mxu0 %v1880_v15 }
 0x9c7   :  { %853 = vmatprep.subr.bf16.mxu0 %v1886_v17 }
 0x9ca   :  { %854 = vmatpush1.bf16.msra.mxu0 %v1904_v24 }
 0x9cb   :  { %855 = vmatprep.subr.bf16.mxu0 %v1907_v25 }
 0x9ce   :  { %856 = vmatpush1.bf16.msra.mxu0 %v1920_v28 }
 0x9cf   :  { %997 = vmatprep.subr.bf16.mxu0 %v1849_v3 }
 0xa94   :  { %v735_v56 = vpop.f32.mrb[28].mxu0 }
 0xa95   :  { %v742_v57 = vadd.f32 %v735_v56, %v221_v54  ;;  %v737_v58 = vpop.f32.mrb[29].mxu0 }
 0xa96   :  { %v743_v59 = vadd.f32 %v737_v58, %v223_v55  ;;  %v739_v60 = vpop.f32.mrb[30].mxu0 }
 0xa97   :  { %v1475_v61 = vmul.f32 -1.442695, %v742_v57  ;;  %v740_v62 = vpop.f32.mrb[31].mxu0 }
 0xa98   :  { %v1476_v22 = vmul.f32 -1.442695, %v743_v59  ;;  %v233_v62 = vadd.f32 %v2052_v29, %v1945_v36 }
 0xa99   :  { %1650 = vpow2.f32 %v1475_v61 }
 0xa9a   :  { %1652 = vtanh.f32 %v743_v59 }
 0xaa3   :  { %v1651_v63 = vpop.eup %1650 }
 0xaa4   :  { %v747_v0 = vadd.f32 1.0, %v1651_v63  ;;  %v1653_v1 = vpop.eup %1652  ;;  %v235_v63 = vadd.f32 %v2054_v30, %v1947_v37 }
 0xaa6   :  { %1654 = vrcp.f32 %v747_v0 }
 0xaa7   :  { %1656 = vpow2.f32 %v1476_v22 }
 0xab0   :  { %v1655_v2 = vpop.eup %1654 }
 0xab1   :  { %v752_v4 = vmul.f32 %v1655_v2, %v1653_v1  ;;  %v1657_v23 = vpop.eup %1656  ;;  %v751_v6 = vmul.f32 %v1655_v2, %v683_v48 }
 0xab2   :  { %v762_v5 = vadd.f32 1.0, %v1657_v23 }
 0xab3   :  { %754 = vrot.lane.b32.xlu0 %v752_v4, %s1782_s1 }
 0xab4   :  { %1658 = vrcp.f32 %v762_v5 }
 0xabe   :  { %v1659_v12 = vpop.eup %1658 }
 0xb25   :  { %v755_v10 = vpop.permute.xlu0 %754 }
 0xb26   :  { %v757_v11 = vadd.f32 %v755_v10, %v751_v6 }
 0xb28   :  { %1660 = vtanh.f32 %v757_v11 }
 0xb32   :  { %v1661_v14 = vpop.eup %1660 }
 0xb33   :  { %v765_v16 = vmul.f32 %v1661_v14, %v1659_v12 }
 0xb35   :  { %v768_v18 = vpack.c.bf16 %v765_v16, %v765_v16 }
 0xb37   :  { %770 = vrot.lane.b32.xlu1 %v768_v18, %s1782_s1 }
 0xba9   :  { %v771_v19 = vpop.permute.xlu1 %770 }
 0xbaa   :  { %1477 = vmatmul.mubr.msk.bf16.vlgmr.msra.gmra.mrb[16].mxu1 %vm327_vm2, %v771_v19 }
 0xbab   :  { %924 = vmatpush1.bf16.msra.mxu1 %v1861_v8  ;;  %955 = vmatprep.mubr.bf16.mxu1 %v1781_v13 }
 0xbac   :  { %925 = vmatprep.subr.bf16.mxu1 %v1863_v9 }
 0xbaf   :  { %926 = vmatpush1.bf16.msra.mxu1 %v1880_v15 }
 0xbb0   :  { %927 = vmatprep.subr.bf16.mxu1 %v1886_v17 }
 0xbb3   :  { %928 = vmatpush1.bf16.msra.mxu1 %v1904_v24 }
 0xbb4   :  { %929 = vmatprep.subr.bf16.mxu1 %v1907_v25 }
 0xbb7   :  { %930 = vmatpush1.bf16.msra.mxu1 %v1920_v28 }
 0xbb8   :  { %1071 = vmatprep.subr.bf16.mxu1 %v1849_v3 }
 0xc7d   :  { %v809_v43 = vpop.f32.mrb[16].mxu1 }
 0xc7e   :  { %v816_v44 = vadd.f32 %v809_v43, %v227_v39  ;;  %v811_v20 = vpop.f32.mrb[17].mxu1 }
 0xc7f   :  { %v817_v21 = vadd.f32 %v811_v20, %v229_v42  ;;  %v813_v45 = vpop.f32.mrb[18].mxu1 }
 0xc80   :  { %v1478_v46 = vmul.f32 -1.442695, %v816_v44  ;;  %v814_v47 = vpop.f32.mrb[19].mxu1  ;;  %v241_v45 = vadd.f32 %v2058_v32, %v1947_v37 }
 0xc81   :  { %v1479_v26 = vmul.f32 -1.442695, %v817_v21 }
 0xc82   :  { %1662 = vpow2.f32 %v1478_v46 }
 0xc83   :  { %1664 = vtanh.f32 %v817_v21  ;;  %v239_v21 = vadd.f32 %v2056_v31, %v1945_v36 }
 0xc8c   :  { %v1663_v48 = vpop.eup %1662 }
 0xc8d   :  { %v821_v49 = vadd.f32 1.0, %v1663_v48  ;;  %v1665_v50 = vpop.eup %1664 }
 0xc8f   :  { %1666 = vrcp.f32 %v821_v49 }
 0xc90   :  { %1668 = vpow2.f32 %v1479_v26 }
 0xc99   :  { %v1667_v51 = vpop.eup %1666 }
 0xc9a   :  { %v826_v52 = vmul.f32 %v1667_v51, %v1665_v50  ;;  %v1669_v27 = vpop.eup %1668  ;;  %v825_v54 = vmul.f32 %v1667_v51, %v757_v11 }
 0xc9b   :  { %v836_v53 = vadd.f32 1.0, %v1669_v27 }
 0xc9c   :  { %828 = vrot.lane.b32.xlu0 %v826_v52, %s1782_s1 }
 0xc9d   :  { %1670 = vrcp.f32 %v836_v53 }
 0xca7   :  { %v1671_v57 = vpop.eup %1670 }
 0xd0e   :  { %v829_v55 = vpop.permute.xlu0 %828 }
 0xd0f   :  { %v831_v56 = vadd.f32 %v829_v55, %v825_v54 }
 0xd11   :  { %1672 = vtanh.f32 %v831_v56 }
 0xd1b   :  { %v1673_v58 = vpop.eup %1672 }
 0xd1c   :  { %v839_v59 = vmul.f32 %v1673_v58, %v1671_v57 }
 0xd1e   :  { %v842_v60 = vpack.c.bf16 %v839_v59, %v839_v59 }
 0xd20   :  { %844 = vrot.lane.b32.xlu1 %v842_v60, %s1782_s1 }
 0xd92   :  { %v845_v61 = vpop.permute.xlu1 %844 }
 0xd93   :  { %1480 = vmatmul.mubr.msk.bf16.vlgmr.msra.gmra.mrb[32].mxu0 %vm327_vm2, %v845_v61 }
 0xd94   :  { %998 = vmatpush1.bf16.msra.mxu0 %v1861_v8  ;;  %1029 = vmatprep.mubr.bf16.mxu0 %v1781_v13 }
 0xd95   :  { %999 = vmatprep.subr.bf16.mxu0 %v1863_v9 }
 0xd98   :  { %1000 = vmatpush1.bf16.msra.mxu0 %v1880_v15 }
 0xd99   :  { %1001 = vmatprep.subr.bf16.mxu0 %v1886_v17 }
 0xd9c   :  { %1002 = vmatpush1.bf16.msra.mxu0 %v1904_v24 }
 0xd9d   :  { %1003 = vmatprep.subr.bf16.mxu0 %v1907_v25 }
 0xda0   :  { %1004 = vmatpush1.bf16.msra.mxu0 %v1920_v28 }
 0xda1   :  { %1145 = vmatprep.subr.bf16.mxu0 %v1849_v3 }
 0xe66   :  { %v883_v0 = vpop.f32.mrb[32].mxu0 }
 0xe67   :  { %v890_v1 = vadd.f32 %v883_v0, %v233_v62  ;;  %v885_v2 = vpop.f32.mrb[33].mxu0 }
 0xe68   :  { %v891_v4 = vadd.f32 %v885_v2, %v235_v63  ;;  %v887_v22 = vpop.f32.mrb[34].mxu0 }
 0xe69   :  { %v1481_v23 = vmul.f32 -1.442695, %v890_v1  ;;  %v888_v5 = vpop.f32.mrb[35].mxu0  ;;  %v245_v1 = vadd.f32 %v2060_v33, %v1945_v36 }
 0xe6a   :  { %v1482_v29 = vmul.f32 -1.442695, %v891_v4 }
 0xe6b   :  { %1674 = vpow2.f32 %v1481_v23 }
 0xe6c   :  { %1676 = vtanh.f32 %v891_v4 }
 0xe75   :  { %v1675_v6 = vpop.eup %1674 }
 0xe76   :  { %v895_v10 = vadd.f32 1.0, %v1675_v6  ;;  %v1677_v11 = vpop.eup %1676 }
 0xe78   :  { %1678 = vrcp.f32 %v895_v10 }
 0xe79   :  { %1680 = vpow2.f32 %v1482_v29 }
 0xe82   :  { %v1679_v3 = vpop.eup %1678 }
 0xe83   :  { %v900_v12 = vmul.f32 %v1679_v3, %v1677_v11  ;;  %v1681_v30 = vpop.eup %1680  ;;  %v899_v16 = vmul.f32 %v1679_v3, %v831_v56 }
 0xe84   :  { %v910_v14 = vadd.f32 1.0, %v1681_v30 }
 0xe85   :  { %902 = vrot.lane.b32.xlu0 %v900_v12, %s1782_s1 }
 0xe86   :  { %1682 = vrcp.f32 %v910_v14 }
 0xe90   :  { %v1683_v39 = vpop.eup %1682 }
 0xef7   :  { %v903_v18 = vpop.permute.xlu0 %902 }
 0xef8   :  { %v905_v19 = vadd.f32 %v903_v18, %v899_v16  ;;  %v251_v18 = vadd.f32 %v2064_v35, %v1945_v36 }
 0xefa   :  { %1684 = vtanh.f32 %v905_v19 }
 0xf04   :  { %v1685_v42 = vpop.eup %1684 }
 0xf05   :  { %v913_v43 = vmul.f32 %v1685_v42, %v1683_v39 }
 0xf07   :  { %v916_v44 = vpack.c.bf16 %v913_v43, %v913_v43 }
 0xf09   :  { %918 = vrot.lane.b32.xlu1 %v916_v44, %s1782_s1 }
 0xf7b   :  { %v919_v20 = vpop.permute.xlu1 %918 }
 0xf7c   :  { %1483 = vmatmul.mubr.msk.bf16.vlgmr.msra.gmra.mrb[20].mxu1 %vm327_vm2, %v919_v20 }
 0xf7d   :  { %1072 = vmatpush1.bf16.msra.mxu1 %v1861_v8  ;;  %1103 = vmatprep.mubr.bf16.mxu1 %v1781_v13 }
 0xf7e   :  { %1073 = vmatprep.subr.bf16.mxu1 %v1863_v9 }
 0xf81   :  { %1074 = vmatpush1.bf16.msra.mxu1 %v1880_v15 }
 0xf82   :  { %1075 = vmatprep.subr.bf16.mxu1 %v1886_v17 }
 0xf85   :  { %1076 = vmatpush1.bf16.msra.mxu1 %v1904_v24 }
 0xf86   :  { %1077 = vmatprep.subr.bf16.mxu1 %v1907_v25 }
 0xf89   :  { %1078 = vmatpush1.bf16.msra.mxu1 %v1920_v28 }
0x104f   :  { %v957_v46 = vpop.f32.mrb[20].mxu1 }
0x1050   :  { %v964_v47 = vadd.f32 %v957_v46, %v239_v21  ;;  %v959_v48 = vpop.f32.mrb[21].mxu1 }
0x1051   :  { %v965_v49 = vadd.f32 %v959_v48, %v241_v45  ;;  %v961_v50 = vpop.f32.mrb[22].mxu1 }
0x1052   :  { %v1484_v51 = vmul.f32 -1.442695, %v964_v47  ;;  %v962_v52 = vpop.f32.mrb[23].mxu1 }
0x1053   :  { %v1485_v31 = vmul.f32 -1.442695, %v965_v49 }
0x1054   :  { %1686 = vpow2.f32 %v1484_v51 }
0x1055   :  { %1688 = vtanh.f32 %v965_v49 }
0x105e   :  { %v1687_v26 = vpop.eup %1686 }
0x105f   :  { %v969_v27 = vadd.f32 1.0, %v1687_v26  ;;  %v1689_v53 = vpop.eup %1688 }
0x1061   :  { %1690 = vrcp.f32 %v969_v27 }
0x1062   :  { %1692 = vpow2.f32 %v1485_v31 }
0x106b   :  { %v1691_v54 = vpop.eup %1690 }
0x106c   :  { %v974_v55 = vmul.f32 %v1691_v54, %v1689_v53  ;;  %v1693_v32 = vpop.eup %1692  ;;  %v973_v57 = vmul.f32 %v1691_v54, %v905_v19  ;;  %v253_v19 = vadd.f32 %v2066_v38, %v1947_v37 }
0x106d   :  { %v984_v56 = vadd.f32 1.0, %v1693_v32 }
0x106e   :  { %976 = vrot.lane.b32.xlu0 %v974_v55, %s1782_s1 }
0x106f   :  { %1694 = vrcp.f32 %v984_v56  ;;  %v257_v56 = vadd.f32 %v2069_v40, %v1945_v36  ;;  %v1210_v36 = vld [vmem:[#allocation4] sm:$0xff]  ;;  %v1211_v40 = vld [vmem:[#allocation4 + $0x8] sm:$0xff] }
0x1079   :  { %v1695_v60 = vpop.eup %1694 }
0x10e0   :  { %v977_v58 = vpop.permute.xlu0 %976 }
0x10e1   :  { %v979_v59 = vadd.f32 %v977_v58, %v973_v57  ;;  %v259_v57 = vadd.f32 %v2073_v41, %v1947_v37  ;;  %v1783_v41 = vmov 0.0|0.0  }
0x10e2   :  { %1556 = vmatprep.subr.bf16.mxu1 %v1783_v41 }
0x10e3   :  { %1696 = vtanh.f32 %v979_v59 }
0x10ed   :  { %v1697_v61 = vpop.eup %1696 }
0x10ee   :  { %v987_v62 = vmul.f32 %v1697_v61, %v1695_v60 }
0x10f0   :  { %v990_v63 = vpack.c.bf16 %v987_v62, %v987_v62 }
0x10f2   :  { %992 = vrot.lane.b32.xlu1 %v990_v63, %s1782_s1 }
0x1164   :  { %v993_v0 = vpop.permute.xlu1 %992 }
0x1165   :  { %1486 = vmatmul.mubr.msk.bf16.vlgmr.msra.gmra.mrb[36].mxu0 %vm327_vm2, %v993_v0 }
0x1166   :  { %1146 = vmatpush1.bf16.msra.mxu0 %v1861_v8  ;;  %1177 = vmatprep.mubr.bf16.mxu0 %v1781_v13  ;;  %v247_v8 = vadd.f32 %v2062_v34, %v1947_v37  ;;  %v1212_v37 = vld [vmem:[#allocation4 + $0x10] sm:$0xff] }
0x1167   :  { %1147 = vmatprep.subr.bf16.mxu0 %v1863_v9 }
0x116a   :  { %1148 = vmatpush1.bf16.msra.mxu0 %v1880_v15 }
0x116b   :  { %1149 = vmatprep.subr.bf16.mxu0 %v1886_v17 }
0x116e   :  { %1150 = vmatpush1.bf16.msra.mxu0 %v1904_v24 }
0x116f   :  { %1151 = vmatprep.subr.bf16.mxu0 %v1907_v25 }
0x1172   :  { %1152 = vmatpush1.bf16.msra.mxu0 %v1920_v28 }
0x1173   :  { %1568 = vmatprep.subr.bf16.mxu0 %v1783_v41 }
0x1238   :  { %v1031_v2 = vpop.f32.mrb[36].mxu0 }
0x1239   :  { %v1038_v13 = vadd.f32 %v1031_v2, %v245_v1  ;;  %v1033_v4 = vpop.f32.mrb[37].mxu0 }
0x123a   :  { %v1039_v9 = vadd.f32 %v1033_v4, %v247_v8  ;;  %v1035_v22 = vpop.f32.mrb[38].mxu0 }
0x123b   :  { %v1487_v15 = vmul.f32 -1.442695, %v1038_v13  ;;  %v1036_v23 = vpop.f32.mrb[39].mxu0  ;;  %v1213_v22 = vld [vmem:[#allocation4 + $0x18] sm:$0xff] }
0x123c   :  { %v1488_v33 = vmul.f32 -1.442695, %v1039_v9  ;;  %v1214_v23 = vld [vmem:[#allocation4 + $0x20] sm:$0xff] }
0x123d   :  { %1698 = vpow2.f32 %v1487_v15  ;;  %v1560_v15 = vpack.c.bf16 %v1213_v22, %v1212_v37 }
0x123e   :  { %1700 = vtanh.f32 %v1039_v9  ;;  %v1557_v9 = vpack.c.bf16 %v1211_v40, %v1210_v36 }
0x1247   :  { %v1699_v17 = vpop.eup %1698 }
0x1248   :  { %v1043_v24 = vadd.f32 1.0, %v1699_v17  ;;  %v1701_v25 = vpop.eup %1700  ;;  %v1215_v17 = vld [vmem:[#allocation4 + $0x28] sm:$0xff] }
0x124a   :  { %1702 = vrcp.f32 %v1043_v24  ;;  %v1563_v24 = vpack.c.bf16 %v1215_v17, %v1214_v23 }
0x124b   :  { %1704 = vpow2.f32 %v1488_v33 }
0x1254   :  { %v1703_v28 = vpop.eup %1702 }
0x1255   :  { %v1048_v5 = vmul.f32 %v1703_v28, %v1701_v25  ;;  %v1705_v34 = vpop.eup %1704  ;;  %v1047_v10 = vmul.f32 %v1703_v28, %v979_v59  ;;  %v1216_v25 = vld [vmem:[#allocation4 + $0x30] sm:$0xff]  ;;  %v1217_v28 = vld [vmem:[#allocation4 + $0x38] sm:$0xff] }
0x1256   :  { %v1058_v6 = vadd.f32 1.0, %v1705_v34 }
0x1257   :  { %1050 = vrot.lane.b32.xlu0 %v1048_v5, %s1782_s1  ;;  %v1566_v5 = vpack.c.bf16 %v1217_v28, %v1216_v25 }
0x1258   :  { %1706 = vrcp.f32 %v1058_v6 }
0x1262   :  { %v1707_v12 = vpop.eup %1706 }
0x12c9   :  { %v1051_v11 = vpop.permute.xlu0 %1050 }
0x12ca   :  { %v1053_v3 = vadd.f32 %v1051_v11, %v1047_v10 }
0x12cc   :  { %1708 = vtanh.f32 %v1053_v3 }
0x12d6   :  { %v1709_v29 = vpop.eup %1708 }
0x12d7   :  { %v1061_v30 = vmul.f32 %v1709_v29, %v1707_v12 }
0x12d9   :  { %v1064_v14 = vpack.c.bf16 %v1061_v30, %v1061_v30 }
0x12db   :  { %1066 = vrot.lane.b32.xlu1 %v1064_v14, %s1782_s1  ;;  %v1328_v14 = vld [vmem:[%s2241_s5] sm:$0xff] }
0x134d   :  { %v1067_v16 = vpop.permute.xlu1 %1066 }
0x134e   :  { %1489 = vmatmul.mubr.msk.bf16.vlgmr.msra.gmra.mrb[24].mxu1 %vm327_vm2, %v1067_v16  ;;  %v1329_v16 = vld [vmem:[%s2241_s5 + $0x8] sm:$0xff] }
0x134f   :  { %1534 = vmatprep.mubr.msk.f32.mxu1 %vm1784_vm3, %v1780_v7  ;;  %1558 = vmatpush3.bf16.msra.mxu1 %v1557_v9 }
0x1350   :  { %1559 = vmatprep.subr.bf16.mxu1 %v1783_v41 }
0x1353   :  { %1561 = vmatpush3.bf16.msra.mxu1 %v1560_v15 }
0x1354   :  { %1562 = vmatprep.subr.bf16.mxu1 %v1783_v41 }
0x1357   :  { %1564 = vmatpush3.bf16.msra.mxu1 %v1563_v24 }
0x1358   :  { %1565 = vmatprep.subr.bf16.mxu1 %v1783_v41 }
0x135b   :  { %1567 = vmatpush3.bf16.msra.mxu1 %v1566_v5 }
0x1421   :  { %v1105_v39 = vpop.f32.mrb[24].mxu1 }
0x1422   :  { %v1112_v42 = vadd.f32 %v1105_v39, %v251_v18  ;;  %v1107_v43 = vpop.f32.mrb[25].mxu1  ;;  %v1569_v18 = vpack.c.bf16 %v1329_v16, %v1328_v14  ;;  %v1331_v39 = vld [vmem:[%s2241_s5 + $0x18] sm:$0xff]  ;;  %v1435_v14 = vstv %s1499_s19 }
0x1423   :  { %v1113_v44 = vadd.f32 %v1107_v43, %v253_v19  ;;  %v1109_v20 = vpop.f32.mrb[26].mxu1  ;;  %v1330_v19 = vld [vmem:[%s2241_s5 + $0x10] sm:$0xff]  ;;  %v1332_v43 = vld [vmem:[%s2241_s5 + $0x20] sm:$0xff] }
0x1424   :  { %v1490_v21 = vmul.f32 -1.442695, %v1112_v42  ;;  %v1110_v45 = vpop.f32.mrb[27].mxu1  ;;  %v1572_v42 = vpack.c.bf16 %v1331_v39, %v1330_v19 }
0x1425   :  { %v1491_v35 = vmul.f32 -1.442695, %v1113_v44  ;;  %v1335_v45 = vld [vmem:[%s2241_s5 + $0x38] sm:$0xff] }
0x1426   :  { %1710 = vpow2.f32 %v1490_v21  ;;  %v1334_v21 = vld [vmem:[%s2241_s5 + $0x30] sm:$0xff] }
0x1427   :  { %1712 = vtanh.f32 %v1113_v44  ;;  %v1333_v44 = vld [vmem:[%s2241_s5 + $0x28] sm:$0xff] }
0x1428   :  { %v1575_v20 = vpack.c.bf16 %v1333_v44, %v1332_v43 }
0x1430   :  { %v1711_v46 = vpop.eup %1710 }
0x1431   :  { %v1117_v47 = vadd.f32 1.0, %v1711_v46  ;;  %v1713_v48 = vpop.eup %1712  ;;  %v1578_v46 = vpack.c.bf16 %v1335_v45, %v1334_v21 }
0x1433   :  { %1714 = vrcp.f32 %v1117_v47 }
0x1434   :  { %1716 = vpow2.f32 %v1491_v35 }
0x143d   :  { %v1715_v49 = vpop.eup %1714 }
0x143e   :  { %v1122_v50 = vmul.f32 %v1715_v49, %v1713_v48  ;;  %v1717_v38 = vpop.eup %1716  ;;  %v1121_v52 = vmul.f32 %v1715_v49, %v1053_v3 }
0x143f   :  { %v1132_v51 = vadd.f32 1.0, %v1717_v38 }
0x1440   :  { %1124 = vrot.lane.b32.xlu0 %v1122_v50, %s1782_s1 }
0x1441   :  { %1718 = vrcp.f32 %v1132_v51 }
0x144b   :  { %v1719_v53 = vpop.eup %1718 }
0x14b2   :  { %v1125_v26 = vpop.permute.xlu0 %1124 }
0x14b3   :  { %v1127_v27 = vadd.f32 %v1125_v26, %v1121_v52 }
0x14b5   :  { %1720 = vtanh.f32 %v1127_v27 }
0x14bf   :  { %v1721_v54 = vpop.eup %1720 }
0x14c0   :  { %v1135_v55 = vmul.f32 %v1721_v54, %v1719_v53 }
0x14c2   :  { %v1138_v31 = vpack.c.bf16 %v1135_v55, %v1135_v55 }
0x14c4   :  { %1140 = vrot.lane.b32.xlu1 %v1138_v31, %s1782_s1 }
0x1536   :  { %v1141_v32 = vpop.permute.xlu1 %1140 }
0x1537   :  { %1492 = vmatmul.mubr.msk.bf16.vlgmr.msra.gmra.mrb[40].mxu0 %vm327_vm2, %v1141_v32 }
0x1538   :  { %1553 = vmatprep.mubr.msk.f32.mxu0 %vm1784_vm3, %v1780_v7  ;;  %1570 = vmatpush3.bf16.msra.mxu0 %v1569_v18 }
0x1539   :  { %1571 = vmatprep.subr.bf16.mxu0 %v1783_v41 }
0x153c   :  { %1573 = vmatpush3.bf16.msra.mxu0 %v1572_v42 }
0x153d   :  { %1574 = vmatprep.subr.bf16.mxu0 %v1783_v41 }
0x1540   :  { %1576 = vmatpush3.bf16.msra.mxu0 %v1575_v20 }
0x1541   :  { %1577 = vmatprep.subr.bf16.mxu0 %v1783_v41 }
0x1544   :  { %1579 = vmatpush3.bf16.msra.mxu0 %v1578_v46 }
0x160a   :  { %v1179_v58 = vpop.f32.mrb[40].mxu0 }
0x160b   :  { %v1186_v59 = vadd.f32 %v1179_v58, %v257_v56  ;;  %v1181_v60 = vpop.f32.mrb[41].mxu0 }
0x160c   :  { %v1187_v61 = vadd.f32 %v1181_v60, %v259_v57  ;;  %v1183_v62 = vpop.f32.mrb[42].mxu0 }
0x160d   :  { %v1493_v63 = vmul.f32 -1.442695, %v1186_v59  ;;  %v1184_v0 = vpop.f32.mrb[43].mxu0 }
0x160e   :  { %v1494_v33 = vmul.f32 -1.442695, %v1187_v61 }
0x160f   :  { %1722 = vpow2.f32 %v1493_v63  ;;  %v1496_v63 = vld [vmem:[%s2240_s4] ss:$0 sm:$0xff] }
0x1610   :  { %1724 = vtanh.f32 %v1187_v61 }
0x1619   :  { %v1723_v1 = vpop.eup %1722 }
0x161a   :  { %v1191_v8 = vadd.f32 1.0, %v1723_v1  ;;  %v1725_v2 = vpop.eup %1724  ;;  %v1497_v1 = vld [vmem:[%s2240_s4 + $0x1] ss:$0 sm:$0xff]  ;;  %s1431_s4 = sld [smem:[#allocation7]] }
0x161c   :  { %1726 = vrcp.f32 %v1191_v8 }
0x161d   :  { %1728 = vpow2.f32 %v1494_v33 }
0x1626   :  { %v1727_v13 = vpop.eup %1726 }
0x1627   :  { %v1196_v4 = vmul.f32 %v1727_v13, %v1725_v2  ;;  %v1729_v34 = vpop.eup %1728  ;;  %v1195_v10 = vmul.f32 %v1727_v13, %v1127_v27 }
0x1628   :  { %v1206_v6 = vadd.f32 1.0, %v1729_v34 }
0x1629   :  { %1198 = vrot.lane.b32.xlu0 %v1196_v4, %s1782_s1 }
0x162a   :  { %1730 = vrcp.f32 %v1206_v6 }
0x1634   :  { %v1731_v3 = vpop.eup %1730 }
0x169b   :  { %v1199_v7 = vpop.permute.xlu0 %1198 }
0x169c   :  { %v1201_v11 = vadd.f32 %v1199_v7, %v1195_v10 }
0x169e   :  { %1732 = vtanh.f32 %v1201_v11 }
0x16a8   :  { %v1733_v12 = vpop.eup %1732 }
0x16a9   :  { %v1209_v29 = vmul.f32 %v1733_v12, %v1731_v3 }
0x16ab   :  { %1219 = vrot.lane.b32.xlu1 %v1209_v29, %s1782_s1  ;;  %v1432_v29 = vstv %s1431_s4 }
0x171d   :  { %v1220_v30 = vpop.permute.xlu1 %1219 }
0x171e   :  { %1535 = vmatmul.mubr.msk.f32.vlgmr.msra.gmra.mrb[28].mxu1 %vm327_vm2, %v1220_v30 }
0x17f1   :  { %v1289_v47 = vpop.f32.mrb[28].mxu1 }
0x17f2   :  { %v1293_v48 = vsel %vm327_vm2, %v1289_v47, 0.0  ;;  %v1536_v49 = vpop.f32.mrb[29].mxu1 }
0x17f3   :  { %v1294_v50 = vrot.slane %v1293_v48, 4 }
0x17f5   :  { %v1295_v35 = vadd.f32 %v1294_v50, %v1293_v48 }
0x17f7   :  { %v1296_v38 = vrot.slane %v1295_v35, 2 }
0x17f9   :  { %v1297_v51 = vadd.f32 %v1296_v38, %v1295_v35 }
0x17fb   :  { %v1298_v52 = vrot.slane %v1297_v51, 1 }
0x17fd   :  { %v1299_v26 = vadd.f32 %v1298_v52, %v1297_v51 }
0x17ff   :  { %v1301_v27 = vmul.f32 0.125, %v1299_v26 }
0x1801   :  { %v1302_v53 = vsub.f32 %v1289_v47, %v1301_v27 }
0x1803   :  { %v1303_v54 = vmul.f32 %v1302_v53, %v1302_v53 }
0x1805   :  { %v1304_v55 = vsel %vm327_vm2, %v1303_v54, 0.0 }
0x1806   :  { %v1305_v31 = vrot.slane %v1304_v55, 4 }
0x1808   :  { %v1306_v32 = vadd.f32 %v1305_v31, %v1304_v55 }
0x180a   :  { %v1307_v56 = vrot.slane %v1306_v32, 2 }
0x180c   :  { %v1308_v57 = vadd.f32 %v1307_v56, %v1306_v32 }
0x180e   :  { %v1309_v58 = vrot.slane %v1308_v57, 1 }
0x1810   :  { %v1310_v59 = vadd.f32 %v1309_v58, %v1308_v57 }
0x1812   :  { %v1311_v60 = vmul.f32 0.125, %v1310_v59 }
0x1814   :  { %v1312_v61 = vadd.f32 1e-05, %v1311_v60 }
0x1816   :  { %1734 = vrsqrt.f32 %v1312_v61 }
0x1820   :  { %v1735_v62 = vpop.eup %1734 }
0x1821   :  { %v1314_v0 = vmul.f32 %v1735_v62, %v1302_v53 }
0x1823   :  { %v1320_v8 = vmul.f32 %v1496_v63, %v1314_v0 }
0x1825   :  { %v1326_v2 = vadd.f32 %v1497_v1, %v1320_v8 }
0x1827   :  { %v1327_v13 = vmax.f32 %v1326_v2, 0.0 }
0x1829   :  { %1554 = vmatmul.mubr.msk.f32.vlgmr.msra.gmra.mrb[44].mxu0 %vm327_vm2, %v1327_v13 }
0x18fc   :  { %v1405_v4 = vpop.f32.mrb[44].mxu0 }
0x18fd   :  { %v1410_v36 = vsel %vm1409_vm4, %v1405_v4, 0.0  ;;  %v1555_v40 = vpop.f32.mrb[45].mxu0 }
0x18fe   :  { %v1411_v37 = vrot.slane %v1410_v36, 4 }
0x1900   :  { %v1412_v41 = vadd.f32 %v1411_v37, %v1410_v36 }
0x1902   :  { %v1413_v9 = vrot.slane %v1412_v41, 2 }
0x1904   :  { %v1414_v22 = vadd.f32 %v1413_v9, %v1412_v41 }
0x1906   :  { %v1415_v15 = vrot.slane %v1414_v22, 1 }
0x1908   :  { %v1416_v23 = vadd.f32 %v1415_v15, %v1414_v22 }
0x190a   :  { %v1417_v17 = vmul.f32 0.125, %v1416_v23 }
0x190c   :  { %v1418_v24 = vsub.f32 %v1405_v4, %v1417_v17 }
0x190e   :  { %v1419_v25 = vmul.f32 %v1418_v24, %v1418_v24 }
0x1910   :  { %v1420_v28 = vsel %vm1409_vm4, %v1419_v25, 0.0 }
0x1911   :  { %v1421_v5 = vrot.slane %v1420_v28, 4 }
0x1913   :  { %v1422_v33 = vadd.f32 %v1421_v5, %v1420_v28 }
0x1915   :  { %v1423_v34 = vrot.slane %v1422_v33, 2 }
0x1917   :  { %v1424_v6 = vadd.f32 %v1423_v34, %v1422_v33 }
0x1919   :  { %v1425_v10 = vrot.slane %v1424_v6, 1 }
0x191b   :  { %v1426_v7 = vadd.f32 %v1425_v10, %v1424_v6 }
0x191d   :  { %v1427_v11 = vmul.f32 0.125, %v1426_v7 }
0x191f   :  { %v1428_v3 = vadd.f32 1e-05, %v1427_v11 }
0x1921   :  { %1736 = vrsqrt.f32 %v1428_v3 }
0x192b   :  { %v1737_v12 = vpop.eup %1736 }
0x192c   :  { %v1430_v30 = vmul.f32 %v1737_v12, %v1418_v24 }
0x192e   :  { %v1433_v16 = vmul.f32 %v1432_v29, %v1430_v30 }
0x1930   :  { %v1436_v18 = vadd.f32 %v1435_v14, %v1433_v16 }
0x1932   :  { %v1437_v19 = vmax.f32 %v1436_v18, 0.0 }
0x1934   :  { %1438 = vst.msk [vmem:[%s2243_s7] sm:$0xff] %vm1409_vm4, %v1437_v19 }
0x1935   :  { %1443 = vsyncpa [#allocation5], 1 }
0x1936   :  { %1444 = vsyncpa [#allocation6], 1 }

</bundles_post_ra>
